<compile_context>
chip_gen: v7x
topology: tpu7x:2x2x1
jax: 0.10.0
libtpu: 0.0.40
codegen_flags: <defaults>
</compile_context>

<pallas_src>
import functools

import jax
import jax.numpy as jnp
import numpy as np
from jax.experimental import pallas as pl
from jax.experimental.pallas import tpu as pltpu


def _round_up(x, m):
    return ((x + m - 1) // m) * m


def _fused_block_kernel(body_ref, top_ref, bot_ref,
                        w1_ref, b1_ref, w2_ref, b2_ref,
                        o_ref, xpad_ref, ipad_ref, *, TH, W, cdtype):
    """One (batch, row-tile) step of conv3x3+ReLU -> conv3x3+ReLU.

    body_ref: (1, TH, W, Cin)      tile body rows
    top_ref : (1, 2, W, Cin)       halo rows above (clamped; zeroed at t==0)
    bot_ref : (1, 2, W, Cin)       halo rows below (clamped; zeroed at t==T-1)
    w*_ref  : (3, 3*Ci, Co)        kw-folded weights (VMEM-resident)
    b*_ref  : (1, Co)              biases (f32)
    o_ref   : (1, TH, W, Cout)     output tile
    xpad_ref: (TH+4, Wp, Cin)      VMEM scratch: padded conv1 input window
    ipad_ref: (TH+2, Wp, Cmid)     VMEM scratch: padded intermediate
    """
    t = pl.program_id(1)
    n_t = pl.num_programs(1)

    cin = body_ref.shape[-1]
    cmid = w1_ref.shape[-1]
    cout = w2_ref.shape[-1]
    r1 = TH + 2

    # ---- stage-1 input window: zero-padded (TH+4, W+2, Cin) in VMEM ---------
    xpad_ref[:, 0:1, :] = jnp.zeros((TH + 4, 1, cin), cdtype)
    xpad_ref[:, W + 1:W + 2, :] = jnp.zeros((TH + 4, 1, cin), cdtype)
    xpad_ref[0:2, 1:W + 1, :] = top_ref[0].astype(cdtype)
    xpad_ref[2:TH + 2, 1:W + 1, :] = body_ref[0].astype(cdtype)
    xpad_ref[TH + 2:TH + 4, 1:W + 1, :] = bot_ref[0].astype(cdtype)

    # Halo rows outside the image must be zero (pad=1 in H); the clamped
    # BlockSpecs delivered in-bounds-but-wrong rows on boundary tiles.
    @pl.when(t == 0)
    def _():
        xpad_ref[0:2, 1:W + 1, :] = jnp.zeros((2, W, cin), cdtype)

    @pl.when(t == n_t - 1)
    def _():
        xpad_ref[TH + 2:TH + 4, 1:W + 1, :] = jnp.zeros((2, W, cin), cdtype)

    xp = xpad_ref[...]

    def tap(src, kh, rows, c):
        # im2col over the kw taps: lane-axis concat of the three W-shifted
        # slices -> one matmul per kh with contraction depth 3*c.
        return jnp.concatenate(
            [src[kh:kh + rows, 0:W, :],
             src[kh:kh + rows, 1:W + 1, :],
             src[kh:kh + rows, 2:W + 2, :]], axis=-1).reshape(rows * W, 3 * c)

    # ---- conv1 + ReLU over TH+2 rows (the +-1 rows feed conv2's halo) -------
    acc1 = jnp.dot(tap(xp, 0, r1, cin), w1_ref[0],
                   preferred_element_type=jnp.float32)
    for kh in (1, 2):
        acc1 = acc1 + jnp.dot(tap(xp, kh, r1, cin), w1_ref[kh],
                              preferred_element_type=jnp.float32)
    acc1 = jnp.maximum(acc1 + b1_ref[...], 0.0)
    inter = acc1.reshape(r1, W, cmid).astype(cdtype)

    # ---- stage-2 input window: zero-padded (TH+2, W+2, Cmid) in VMEM --------
    ipad_ref[:, 0:1, :] = jnp.zeros((r1, 1, cmid), cdtype)
    ipad_ref[:, W + 1:W + 2, :] = jnp.zeros((r1, 1, cmid), cdtype)
    ipad_ref[:, 1:W + 1, :] = inter

    # Intermediate rows outside the image must be exactly zero, not
    # ReLU(bias + conv1(0)).
    @pl.when(t == 0)
    def _():
        ipad_ref[0:1, 1:W + 1, :] = jnp.zeros((1, W, cmid), cdtype)

    @pl.when(t == n_t - 1)
    def _():
        ipad_ref[TH + 1:TH + 2, 1:W + 1, :] = jnp.zeros((1, W, cmid), cdtype)

    ip = ipad_ref[...]

    # ---- conv2 + ReLU over the TH output rows --------------------------------
    acc2 = jnp.dot(tap(ip, 0, TH, cmid), w2_ref[0],
                   preferred_element_type=jnp.float32)
    for kh in (1, 2):
        acc2 = acc2 + jnp.dot(tap(ip, kh, TH, cmid), w2_ref[kh],
                              preferred_element_type=jnp.float32)
    acc2 = jnp.maximum(acc2 + b2_ref[...], 0.0)
    o_ref[...] = acc2.reshape(1, TH, W, cout).astype(o_ref.dtype)


def _pick_tile_h(H, tile_h):
    """Largest even divisor of H that is <= tile_h (no silent th=H fallback)."""
    assert H % 2 == 0, "kernel expects an even spatial height"
    th = 2
    for d in range(2, min(tile_h, H) + 1, 2):
        if H % d == 0:
            th = d
    return th


def unet_conv_block_nhwc(x_nhwc, params, *, tile_h=16,
                         compute_dtype=jnp.bfloat16, out_dtype=None,
                         pad_channels_to=None):
    """Fused UNetConvBlock forward on NHWC input. Returns (N, H, W, Cout)."""
    (w1, b1), (w2, b2) = params
    N, H, W, Cin = x_nhwc.shape
    Cmid, Cout = w1.shape[-1], w2.shape[-1]
    out_dtype = x_nhwc.dtype if out_dtype is None else out_dtype

    # Lane-dense channels: zero-pad Cmid/Cout (numerically exact) so stores and
    # MXU/VPU lanes are dense; recommended pad_channels_to=128 for C >= 64.
    if pad_channels_to:
        cm_p = _round_up(Cmid, pad_channels_to)
        co_p = _round_up(Cout, pad_channels_to)
        w1 = jnp.pad(w1, ((0, 0), (0, 0), (0, 0), (0, cm_p - Cmid)))
        b1 = jnp.pad(b1, ((0, cm_p - Cmid),))
        w2 = jnp.pad(w2, ((0, 0), (0, 0), (0, cm_p - Cmid), (0, co_p - Cout)))
        b2 = jnp.pad(b2, ((0, co_p - Cout),))
    else:
        cm_p, co_p = Cmid, Cout

    th = _pick_tile_h(H, tile_h)
    n_tiles = H // th
    hb = th // 2                      # halo blocks are 2 rows -> th/2 block units
    wp = _round_up(W + 2, 8)          # sublane-aligned scratch width

    # Fold kw into the contraction: (3, 3, Ci, Co) -> (3, 3*Ci, Co).
    w1f = w1.astype(compute_dtype).reshape(3, 3 * Cin, cm_p)
    w2f = w2.astype(compute_dtype).reshape(3, 3 * cm_p, co_p)
    b1r = b1.reshape(1, cm_p).astype(jnp.float32)
    b2r = b2.reshape(1, co_p).astype(jnp.float32)

    kernel = functools.partial(_fused_block_kernel, TH=th, W=W,
                               cdtype=compute_dtype)

    body_spec = pl.BlockSpec((1, th, W, Cin), lambda b, t: (b, t, 0, 0))
    # 2-row halo blocks above / below the body tile (clamped into range;
    # out-of-image rows are zeroed in-kernel under pl.when).
    top_spec = pl.BlockSpec(
        (1, 2, W, Cin), lambda b, t: (b, jnp.maximum(t * hb - 1, 0), 0, 0))
    bot_spec = pl.BlockSpec(
        (1, 2, W, Cin),
        lambda b, t: (b, jnp.minimum((t + 1) * hb, H // 2 - 1), 0, 0))
    # Constant index maps -> weights/biases stay resident in VMEM across steps.
    w1_spec = pl.BlockSpec((3, 3 * Cin, cm_p), lambda b, t: (0, 0, 0))
    b1_spec = pl.BlockSpec((1, cm_p), lambda b, t: (0, 0))
    w2_spec = pl.BlockSpec((3, 3 * cm_p, co_p), lambda b, t: (0, 0, 0))
    b2_spec = pl.BlockSpec((1, co_p), lambda b, t: (0, 0))
    out_spec = pl.BlockSpec((1, th, W, co_p), lambda b, t: (b, t, 0, 0))

    # Explicit scoped-VMEM limit sized to the real footprint (v5e default is
    # only 16 MiB), capped at v7x's 64 MiB physical VMEM.
    cb = np.dtype(compute_dtype).itemsize
    xb = np.dtype(x_nhwc.dtype).itemsize
    ob = np.dtype(out_dtype).itemsize
    r1 = th + 2
    est = 2 * ((th + 4) * W * Cin * xb + th * W * co_p * ob)        # I/O tiles (2-buf)
    est += 2 * (3 * 3 * Cin * cm_p + 3 * 3 * cm_p * co_p) * cb      # weights (2-buf)
    est += (th + 4) * wp * Cin * cb + r1 * wp * cm_p * cb           # pad scratch
    est += r1 * W * (3 * Cin * cb + cm_p * (cb + 4))                # stage-1 patch/acc
    est += th * W * (3 * cm_p * cb + co_p * 4)                      # stage-2 patch/acc
    vmem_limit = int(min(64 * 2**20, max(32 * 2**20, 2 * est)))

    y = pl.pallas_call(
        kernel,
        out_shape=jax.ShapeDtypeStruct((N, H, W, co_p), out_dtype),
        grid_spec=pltpu.PrefetchScalarGridSpec(
            num_scalar_prefetch=0,
            grid=(N, n_tiles),
            in_specs=[body_spec, top_spec, bot_spec,
                      w1_spec, b1_spec, w2_spec, b2_spec],
            out_specs=out_spec,
            scratch_shapes=[
                pltpu.VMEM((th + 4, wp, Cin), compute_dtype),
                pltpu.VMEM((r1, wp, cm_p), compute_dtype),
            ]),
        compiler_params=pltpu.CompilerParams(
            dimension_semantics=("parallel", "parallel"),
            vmem_limit_bytes=vmem_limit),
    )(x_nhwc, x_nhwc, x_nhwc, w1f, b1r, w2f, b2r)

    return y[..., :Cout] if co_p != Cout else y


def unet_conv_block(x_nchw, params, *, tile_h=16, compute_dtype=jnp.bfloat16,
                    out_dtype=None, pad_channels_to=None):
    """Forward of UNetConvBlock(in, out, batch_norm=False, dropout=False).

    Accepts/returns NCHW to mirror the PyTorch module; inside a full UNet use
    unet_conv_block_nhwc so layout transposes happen once at model entry/exit.
    """
    # TODO(synk): batch_norm=True and Dropout2d paths of the module are off by
    # default and are not implemented here.
    x = jnp.transpose(x_nchw, (0, 2, 3, 1))        # NCHW -> NHWC
    y = unet_conv_block_nhwc(x, params, tile_h=tile_h,
                             compute_dtype=compute_dtype, out_dtype=out_dtype,
                             pad_channels_to=pad_channels_to)
    return jnp.transpose(y, (0, 3, 1, 2))          # NHWC -> NCHW


def init_unet_conv_block_params(key, in_size, out_size):
    """Deterministic parameters for the two ConvBnRelu layers (HWIO weights)."""
    k1, k2, k3, k4 = jax.random.split(key, 4)
    s1 = 1.0 / np.sqrt(in_size * 9)
    s2 = 1.0 / np.sqrt(out_size * 9)
    w1 = jax.random.normal(k1, (3, 3, in_size, out_size), jnp.float32) * s1
    b1 = jax.random.normal(k2, (out_size,), jnp.float32) * s1
    w2 = jax.random.normal(k3, (3, 3, out_size, out_size), jnp.float32) * s2
    b2 = jax.random.normal(k4, (out_size,), jnp.float32) * s2
    return (w1, b1), (w2, b2)


def _reference(x_nchw, params):
    """Pure-JAX reference (lax conv, f32) for validation."""
    (w1, b1), (w2, b2) = params
    dn = jax.lax.conv_dimension_numbers(x_nchw.shape, (3, 3, 1, 1),
                                        ("NCHW", "HWIO", "NCHW"))

    def step(x, w, b):
        y = jax.lax.conv_general_dilated(x, w, (1, 1), "SAME",
                                         dimension_numbers=dn)
        y = y + b.reshape(1, -1, 1, 1)
        return jnp.maximum(y, 0.0)

    return step(step(x_nchw, w1, b1), w2, b2)


if __name__ == "__main__":
    key = jax.random.PRNGKey(0)
    kx, kp = jax.random.split(key)

    N, Cin, Cout, H, W = 2, 4, 8, 16, 16
    x = jax.random.normal(kx, (N, Cin, H, W), jnp.float32)
    params = init_unet_conv_block_params(kp, Cin, Cout)

    ref = _reference(x, params)

    # Exact-arithmetic run (f32 matmuls, 2 row-tiles): validates fusion, halo
    # fetch, in-kernel padding and the kw-folded contraction to tight tolerance.
    out_f32 = unet_conv_block(x, params, tile_h=8, compute_dtype=jnp.float32)
    out_f32 = jax.block_until_ready(out_f32)
    np.testing.assert_allclose(np.asarray(out_f32), np.asarray(ref),
                               rtol=2e-4, atol=2e-4)

    # Fast path: bf16 MXU operands, f32 accumulation, lane-dense (padded to
    # 128) intermediate/output channels, 4 row-tiles per image.
    out_bf16 = unet_conv_block(x, params, tile_h=4, pad_channels_to=128)
    out_bf16 = jax.block_until_ready(out_bf16)
    np.testing.assert_allclose(np.asarray(out_bf16), np.asarray(ref),
                               rtol=5e-2, atol=5e-2)

    print("KERNEL_OK")
</pallas_src>

<mosaic_0001>
module attributes {stable_mosaic.version = 11 : i64} {
  func.func @_fused_block_kernel(%arg0: i32, %arg1: i32, %arg2: memref<1x8x16x4xf32, #tpu.memory_space<vmem>>, %arg3: memref<1x2x16x4xf32, #tpu.memory_space<vmem>>, %arg4: memref<1x2x16x4xf32, #tpu.memory_space<vmem>>, %arg5: memref<3x12x8xf32, #tpu.memory_space<vmem>>, %arg6: memref<1x8xf32, #tpu.memory_space<vmem>>, %arg7: memref<3x24x8xf32, #tpu.memory_space<vmem>>, %arg8: memref<1x8xf32, #tpu.memory_space<vmem>>, %arg9: memref<1x8x16x8xf32, #tpu.memory_space<vmem>>, %arg10: memref<12x24x4xf32, #tpu.memory_space<vmem>>, %arg11: memref<10x24x8xf32, #tpu.memory_space<vmem>>) attributes {dimension_semantics = [#tpu.dimension_semantics<parallel>, #tpu.dimension_semantics<parallel>], iteration_bounds = array<i64: 2, 2>, scalar_prefetch = 0 : i64, scratch_operands = 2 : i64, tpu.core_type = #tpu.core_type<tc>, window_params = [{transform_indices = @transform_0, window_bounds = array<i64: 1, 8, 16, 4>}, {transform_indices = @transform_1, window_bounds = array<i64: 1, 2, 16, 4>}, {transform_indices = @transform_2, window_bounds = array<i64: 1, 2, 16, 4>}, {pipeline_mode = #tpu.pipeline_mode<synchronous>, transform_indices = @transform_3, window_bounds = array<i64: 3, 12, 8>}, {pipeline_mode = #tpu.pipeline_mode<synchronous>, transform_indices = @transform_4, window_bounds = array<i64: 1, 8>}, {pipeline_mode = #tpu.pipeline_mode<synchronous>, transform_indices = @transform_5, window_bounds = array<i64: 3, 24, 8>}, {pipeline_mode = #tpu.pipeline_mode<synchronous>, transform_indices = @transform_6, window_bounds = array<i64: 1, 8>}, {transform_indices = @transform_7, window_bounds = array<i64: 1, 8, 16, 8>}]} {
    %cst = arith.constant 0.000000e+00 : f32
    %0 = vector.broadcast %cst : f32 to vector<12x1x4xf32>
    %c0 = arith.constant 0 : index
    %c0_0 = arith.constant 0 : index
    %c0_1 = arith.constant 0 : index
    %1 = vector.load %arg10[%c0, %c0_0, %c0_1] : memref<12x24x4xf32, #tpu.memory_space<vmem>>, vector<12x1x4xf32>
    tpu.vector_store %arg10[%c0, %c0_0, %c0_1], %0 {strides = array<i32>} : memref<12x24x4xf32, #tpu.memory_space<vmem>>, vector<12x1x4xf32>,
    %cst_2 = arith.constant 0.000000e+00 : f32
    %2 = vector.broadcast %cst_2 : f32 to vector<12x1x4xf32>
    %c0_3 = arith.constant 0 : index
    %c17 = arith.constant 17 : index
    %c0_4 = arith.constant 0 : index
    %3 = vector.load %arg10[%c0_3, %c17, %c0_4] : memref<12x24x4xf32, #tpu.memory_space<vmem>>, vector<12x1x4xf32>
    tpu.vector_store %arg10[%c0_3, %c17, %c0_4], %2 {strides = array<i32>} : memref<12x24x4xf32, #tpu.memory_space<vmem>>, vector<12x1x4xf32>,
    %c0_5 = arith.constant 0 : index
    %c0_6 = arith.constant 0 : index
    %c0_7 = arith.constant 0 : index
    %c0_8 = arith.constant 0 : index
    %4 = vector.load %arg3[%c0_5, %c0_6, %c0_7, %c0_8] : memref<1x2x16x4xf32, #tpu.memory_space<vmem>>, vector<1x2x16x4xf32>
    %5 = vector.shape_cast %4 : vector<1x2x16x4xf32> to vector<2x16x4xf32>
    %c0_9 = arith.constant 0 : index
    %c1 = arith.constant 1 : index
    %c0_10 = arith.constant 0 : index
    %6 = vector.load %arg10[%c0_9, %c1, %c0_10] : memref<12x24x4xf32, #tpu.memory_space<vmem>>, vector<2x16x4xf32>
    tpu.vector_store %arg10[%c0_9, %c1, %c0_10], %5 {strides = array<i32>} : memref<12x24x4xf32, #tpu.memory_space<vmem>>, vector<2x16x4xf32>,
    %c0_11 = arith.constant 0 : index
    %c0_12 = arith.constant 0 : index
    %c0_13 = arith.constant 0 : index
    %c0_14 = arith.constant 0 : index
    %7 = vector.load %arg2[%c0_11, %c0_12, %c0_13, %c0_14] : memref<1x8x16x4xf32, #tpu.memory_space<vmem>>, vector<1x8x16x4xf32>
    %8 = vector.shape_cast %7 : vector<1x8x16x4xf32> to vector<8x16x4xf32>
    %c2 = arith.constant 2 : index
    %c1_15 = arith.constant 1 : index
    %c0_16 = arith.constant 0 : index
    %9 = vector.load %arg10[%c2, %c1_15, %c0_16] : memref<12x24x4xf32, #tpu.memory_space<vmem>>, vector<8x16x4xf32>
    tpu.vector_store %arg10[%c2, %c1_15, %c0_16], %8 {strides = array<i32>} : memref<12x24x4xf32, #tpu.memory_space<vmem>>, vector<8x16x4xf32>,
    %c0_17 = arith.constant 0 : index
    %c0_18 = arith.constant 0 : index
    %c0_19 = arith.constant 0 : index
    %c0_20 = arith.constant 0 : index
    %10 = vector.load %arg4[%c0_17, %c0_18, %c0_19, %c0_20] : memref<1x2x16x4xf32, #tpu.memory_space<vmem>>, vector<1x2x16x4xf32>
    %11 = vector.shape_cast %10 : vector<1x2x16x4xf32> to vector<2x16x4xf32>
    %c10 = arith.constant 10 : index
    %c1_21 = arith.constant 1 : index
    %c0_22 = arith.constant 0 : index
    %12 = vector.load %arg10[%c10, %c1_21, %c0_22] : memref<12x24x4xf32, #tpu.memory_space<vmem>>, vector<2x16x4xf32>
    tpu.vector_store %arg10[%c10, %c1_21, %c0_22], %11 {strides = array<i32>} : memref<12x24x4xf32, #tpu.memory_space<vmem>>, vector<2x16x4xf32>,
    %c0_i32 = arith.constant 0 : i32
    %13 = arith.cmpi eq, %arg1, %c0_i32 : i32
    %14 = arith.extui %13 : i1 to i32
    %c0_i32_23 = arith.constant 0 : i32
    %15 = arith.cmpi ne, %14, %c0_i32_23 : i32
    scf.if %15 {
      %cst_80 = arith.constant 0.000000e+00 : f32
      %97 = vector.broadcast %cst_80 : f32 to vector<2x16x4xf32>
      %c0_81 = arith.constant 0 : index
      %c1_82 = arith.constant 1 : index
      %c0_83 = arith.constant 0 : index
      %98 = vector.load %arg10[%c0_81, %c1_82, %c0_83] : memref<12x24x4xf32, #tpu.memory_space<vmem>>, vector<2x16x4xf32>
      tpu.vector_store %arg10[%c0_81, %c1_82, %c0_83], %97 {strides = array<i32>} : memref<12x24x4xf32, #tpu.memory_space<vmem>>, vector<2x16x4xf32>,
    } else {
    }
    %c1_i32 = arith.constant 1 : i32
    %16 = arith.cmpi eq, %arg1, %c1_i32 : i32
    %17 = arith.extui %16 : i1 to i32
    %c0_i32_24 = arith.constant 0 : i32
    %18 = arith.cmpi ne, %17, %c0_i32_24 : i32
    scf.if %18 {
      %cst_80 = arith.constant 0.000000e+00 : f32
      %97 = vector.broadcast %cst_80 : f32 to vector<2x16x4xf32>
      %c10_81 = arith.constant 10 : index
      %c1_82 = arith.constant 1 : index
      %c0_83 = arith.constant 0 : index
      %98 = vector.load %arg10[%c10_81, %c1_82, %c0_83] : memref<12x24x4xf32, #tpu.memory_space<vmem>>, vector<2x16x4xf32>
      tpu.vector_store %arg10[%c10_81, %c1_82, %c0_83], %97 {strides = array<i32>} : memref<12x24x4xf32, #tpu.memory_space<vmem>>, vector<2x16x4xf32>,
    } else {
    }
    %c0_25 = arith.constant 0 : index
    %c0_26 = arith.constant 0 : index
    %c0_27 = arith.constant 0 : index
    %19 = vector.load %arg10[%c0_25, %c0_26, %c0_27] : memref<12x24x4xf32, #tpu.memory_space<vmem>>, vector<12x24x4xf32>
    %20 = vector.extract_strided_slice %19 {offsets = [0, 0, 0], sizes = [10, 16, 4], strides = [1, 1, 1]} : vector<12x24x4xf32> to vector<10x16x4xf32>
    %21 = vector.extract_strided_slice %19 {offsets = [0, 1, 0], sizes = [10, 16, 4], strides = [1, 1, 1]} : vector<12x24x4xf32> to vector<10x16x4xf32>
    %22 = vector.extract_strided_slice %19 {offsets = [0, 2, 0], sizes = [10, 16, 4], strides = [1, 1, 1]} : vector<12x24x4xf32> to vector<10x16x4xf32>
    %23 = tpu.concatenate %20, %21, %22 in 2 : vector<10x16x4xf32>, vector<10x16x4xf32>, vector<10x16x4xf32> -> vector<10x16x12xf32>
    %24 = vector.shape_cast %23 : vector<10x16x12xf32> to vector<160x12xf32>
    %c0_28 = arith.constant 0 : index
    %c0_29 = arith.constant 0 : index
    %c0_30 = arith.constant 0 : index
    %25 = vector.load %arg5[%c0_28, %c0_29, %c0_30] : memref<3x12x8xf32, #tpu.memory_space<vmem>>, vector<1x12x8xf32>
    %26 = vector.shape_cast %25 : vector<1x12x8xf32> to vector<12x8xf32>
    %cst_31 = arith.constant dense<0.000000e+00> : vector<160x8xf32>
    %27 = tpu.matmul %24, %26, %cst_31 {dimension_numbers = #tpu.dot_dimension_numbers<[1], [0], [0], [1], [0, 0, 1, 1], [], []>} : vector<160x12xf32>, vector<12x8xf32>, vector<160x8xf32> -> vector<160x8xf32>
    %28 = vector.extract_strided_slice %19 {offsets = [1, 0, 0], sizes = [10, 16, 4], strides = [1, 1, 1]} : vector<12x24x4xf32> to vector<10x16x4xf32>
    %29 = vector.extract_strided_slice %19 {offsets = [1, 1, 0], sizes = [10, 16, 4], strides = [1, 1, 1]} : vector<12x24x4xf32> to vector<10x16x4xf32>
    %30 = vector.extract_strided_slice %19 {offsets = [1, 2, 0], sizes = [10, 16, 4], strides = [1, 1, 1]} : vector<12x24x4xf32> to vector<10x16x4xf32>
    %31 = tpu.concatenate %28, %29, %30 in 2 : vector<10x16x4xf32>, vector<10x16x4xf32>, vector<10x16x4xf32> -> vector<10x16x12xf32>
    %32 = vector.shape_cast %31 : vector<10x16x12xf32> to vector<160x12xf32>
    %c1_32 = arith.constant 1 : index
    %c0_33 = arith.constant 0 : index
    %c0_34 = arith.constant 0 : index
    %33 = vector.load %arg5[%c1_32, %c0_33, %c0_34] : memref<3x12x8xf32, #tpu.memory_space<vmem>>, vector<1x12x8xf32>
    %34 = vector.shape_cast %33 : vector<1x12x8xf32> to vector<12x8xf32>
    %cst_35 = arith.constant dense<0.000000e+00> : vector<160x8xf32>
    %35 = tpu.matmul %32, %34, %cst_35 {dimension_numbers = #tpu.dot_dimension_numbers<[1], [0], [0], [1], [0, 0, 1, 1], [], []>} : vector<160x12xf32>, vector<12x8xf32>, vector<160x8xf32> -> vector<160x8xf32>
    %36 = arith.addf %27, %35 : vector<160x8xf32>
    %37 = vector.extract_strided_slice %19 {offsets = [2, 0, 0], sizes = [10, 16, 4], strides = [1, 1, 1]} : vector<12x24x4xf32> to vector<10x16x4xf32>
    %38 = vector.extract_strided_slice %19 {offsets = [2, 1, 0], sizes = [10, 16, 4], strides = [1, 1, 1]} : vector<12x24x4xf32> to vector<10x16x4xf32>
    %39 = vector.extract_strided_slice %19 {offsets = [2, 2, 0], sizes = [10, 16, 4], strides = [1, 1, 1]} : vector<12x24x4xf32> to vector<10x16x4xf32>
    %40 = tpu.concatenate %37, %38, %39 in 2 : vector<10x16x4xf32>, vector<10x16x4xf32>, vector<10x16x4xf32> -> vector<10x16x12xf32>
    %41 = vector.shape_cast %40 : vector<10x16x12xf32> to vector<160x12xf32>
    %c2_36 = arith.constant 2 : index
    %c0_37 = arith.constant 0 : index
    %c0_38 = arith.constant 0 : index
    %42 = vector.load %arg5[%c2_36, %c0_37, %c0_38] : memref<3x12x8xf32, #tpu.memory_space<vmem>>, vector<1x12x8xf32>
    %43 = vector.shape_cast %42 : vector<1x12x8xf32> to vector<12x8xf32>
    %cst_39 = arith.constant dense<0.000000e+00> : vector<160x8xf32>
    %44 = tpu.matmul %41, %43, %cst_39 {dimension_numbers = #tpu.dot_dimension_numbers<[1], [0], [0], [1], [0, 0, 1, 1], [], []>} : vector<160x12xf32>, vector<12x8xf32>, vector<160x8xf32> -> vector<160x8xf32>
    %45 = arith.addf %36, %44 : vector<160x8xf32>
    %c0_40 = arith.constant 0 : index
    %c0_41 = arith.constant 0 : index
    %46 = vector.load %arg6[%c0_40, %c0_41] : memref<1x8xf32, #tpu.memory_space<vmem>>, vector<1x8xf32>
    %47 = vector.broadcast %46 : vector<1x8xf32> to vector<160x8xf32>
    %48 = arith.addf %45, %47 : vector<160x8xf32>
    %cst_42 = arith.constant 0.000000e+00 : f32
    %49 = vector.broadcast %cst_42 : f32 to vector<160x8xf32>
    %50 = arith.maximumf %48, %49 : vector<160x8xf32>
    %51 = vector.shape_cast %50 : vector<160x8xf32> to vector<10x16x8xf32>
    %cst_43 = arith.constant 0.000000e+00 : f32
    %52 = vector.broadcast %cst_43 : f32 to vector<10x1x8xf32>
    %c0_44 = arith.constant 0 : index
    %c0_45 = arith.constant 0 : index
    %c0_46 = arith.constant 0 : index
    %53 = vector.load %arg11[%c0_44, %c0_45, %c0_46] : memref<10x24x8xf32, #tpu.memory_space<vmem>>, vector<10x1x8xf32>
    tpu.vector_store %arg11[%c0_44, %c0_45, %c0_46], %52 {strides = array<i32>} : memref<10x24x8xf32, #tpu.memory_space<vmem>>, vector<10x1x8xf32>,
    %cst_47 = arith.constant 0.000000e+00 : f32
    %54 = vector.broadcast %cst_47 : f32 to vector<10x1x8xf32>
    %c0_48 = arith.constant 0 : index
    %c17_49 = arith.constant 17 : index
    %c0_50 = arith.constant 0 : index
    %55 = vector.load %arg11[%c0_48, %c17_49, %c0_50] : memref<10x24x8xf32, #tpu.memory_space<vmem>>, vector<10x1x8xf32>
    tpu.vector_store %arg11[%c0_48, %c17_49, %c0_50], %54 {strides = array<i32>} : memref<10x24x8xf32, #tpu.memory_space<vmem>>, vector<10x1x8xf32>,
    %c0_51 = arith.constant 0 : index
    %c1_52 = arith.constant 1 : index
    %c0_53 = arith.constant 0 : index
    %56 = vector.load %arg11[%c0_51, %c1_52, %c0_53] : memref<10x24x8xf32, #tpu.memory_space<vmem>>, vector<10x16x8xf32>
    tpu.vector_store %arg11[%c0_51, %c1_52, %c0_53], %51 {strides = array<i32>} : memref<10x24x8xf32, #tpu.memory_space<vmem>>, vector<10x16x8xf32>,
    %c0_i32_54 = arith.constant 0 : i32
    %57 = arith.cmpi eq, %arg1, %c0_i32_54 : i32
    %58 = arith.extui %57 : i1 to i32
    %c0_i32_55 = arith.constant 0 : i32
    %59 = arith.cmpi ne, %58, %c0_i32_55 : i32
    scf.if %59 {
      %cst_80 = arith.constant 0.000000e+00 : f32
      %97 = vector.broadcast %cst_80 : f32 to vector<1x16x8xf32>
      %c0_81 = arith.constant 0 : index
      %c1_82 = arith.constant 1 : index
      %c0_83 = arith.constant 0 : index
      %98 = vector.load %arg11[%c0_81, %c1_82, %c0_83] : memref<10x24x8xf32, #tpu.memory_space<vmem>>, vector<1x16x8xf32>
      tpu.vector_store %arg11[%c0_81, %c1_82, %c0_83], %97 {strides = array<i32>} : memref<10x24x8xf32, #tpu.memory_space<vmem>>, vector<1x16x8xf32>,
    } else {
    }
    %c1_i32_56 = arith.constant 1 : i32
    %60 = arith.cmpi eq, %arg1, %c1_i32_56 : i32
    %61 = arith.extui %60 : i1 to i32
    %c0_i32_57 = arith.constant 0 : i32
    %62 = arith.cmpi ne, %61, %c0_i32_57 : i32
    scf.if %62 {
      %cst_80 = arith.constant 0.000000e+00 : f32
      %97 = vector.broadcast %cst_80 : f32 to vector<1x16x8xf32>
      %c9 = arith.constant 9 : index
      %c1_81 = arith.constant 1 : index
      %c0_82 = arith.constant 0 : index
      %98 = vector.load %arg11[%c9, %c1_81, %c0_82] : memref<10x24x8xf32, #tpu.memory_space<vmem>>, vector<1x16x8xf32>
      tpu.vector_store %arg11[%c9, %c1_81, %c0_82], %97 {strides = array<i32>} : memref<10x24x8xf32, #tpu.memory_space<vmem>>, vector<1x16x8xf32>,
    } else {
    }
    %c0_58 = arith.constant 0 : index
    %c0_59 = arith.constant 0 : index
    %c0_60 = arith.constant 0 : index
    %63 = vector.load %arg11[%c0_58, %c0_59, %c0_60] : memref<10x24x8xf32, #tpu.memory_space<vmem>>, vector<10x24x8xf32>
    %64 = vector.extract_strided_slice %63 {offsets = [0, 0, 0], sizes = [8, 16, 8], strides = [1, 1, 1]} : vector<10x24x8xf32> to vector<8x16x8xf32>
    %65 = vector.extract_strided_slice %63 {offsets = [0, 1, 0], sizes = [8, 16, 8], strides = [1, 1, 1]} : vector<10x24x8xf32> to vector<8x16x8xf32>
    %66 = vector.extract_strided_slice %63 {offsets = [0, 2, 0], sizes = [8, 16, 8], strides = [1, 1, 1]} : vector<10x24x8xf32> to vector<8x16x8xf32>
    %67 = tpu.concatenate %64, %65, %66 in 2 : vector<8x16x8xf32>, vector<8x16x8xf32>, vector<8x16x8xf32> -> vector<8x16x24xf32>
    %68 = vector.shape_cast %67 : vector<8x16x24xf32> to vector<128x24xf32>
    %c0_61 = arith.constant 0 : index
    %c0_62 = arith.constant 0 : index
    %c0_63 = arith.constant 0 : index
    %69 = vector.load %arg7[%c0_61, %c0_62, %c0_63] : memref<3x24x8xf32, #tpu.memory_space<vmem>>, vector<1x24x8xf32>
    %70 = vector.shape_cast %69 : vector<1x24x8xf32> to vector<24x8xf32>
    %cst_64 = arith.constant dense<0.000000e+00> : vector<128x8xf32>
    %71 = tpu.matmul %68, %70, %cst_64 {dimension_numbers = #tpu.dot_dimension_numbers<[1], [0], [0], [1], [0, 0, 1, 1], [], []>} : vector<128x24xf32>, vector<24x8xf32>, vector<128x8xf32> -> vector<128x8xf32>
    %72 = vector.extract_strided_slice %63 {offsets = [1, 0, 0], sizes = [8, 16, 8], strides = [1, 1, 1]} : vector<10x24x8xf32> to vector<8x16x8xf32>
    %73 = vector.extract_strided_slice %63 {offsets = [1, 1, 0], sizes = [8, 16, 8], strides = [1, 1, 1]} : vector<10x24x8xf32> to vector<8x16x8xf32>
    %74 = vector.extract_strided_slice %63 {offsets = [1, 2, 0], sizes = [8, 16, 8], strides = [1, 1, 1]} : vector<10x24x8xf32> to vector<8x16x8xf32>
    %75 = tpu.concatenate %72, %73, %74 in 2 : vector<8x16x8xf32>, vector<8x16x8xf32>, vector<8x16x8xf32> -> vector<8x16x24xf32>
    %76 = vector.shape_cast %75 : vector<8x16x24xf32> to vector<128x24xf32>
    %c1_65 = arith.constant 1 : index
    %c0_66 = arith.constant 0 : index
    %c0_67 = arith.constant 0 : index
    %77 = vector.load %arg7[%c1_65, %c0_66, %c0_67] : memref<3x24x8xf32, #tpu.memory_space<vmem>>, vector<1x24x8xf32>
    %78 = vector.shape_cast %77 : vector<1x24x8xf32> to vector<24x8xf32>
    %cst_68 = arith.constant dense<0.000000e+00> : vector<128x8xf32>
    %79 = tpu.matmul %76, %78, %cst_68 {dimension_numbers = #tpu.dot_dimension_numbers<[1], [0], [0], [1], [0, 0, 1, 1], [], []>} : vector<128x24xf32>, vector<24x8xf32>, vector<128x8xf32> -> vector<128x8xf32>
    %80 = arith.addf %71, %79 : vector<128x8xf32>
    %81 = vector.extract_strided_slice %63 {offsets = [2, 0, 0], sizes = [8, 16, 8], strides = [1, 1, 1]} : vector<10x24x8xf32> to vector<8x16x8xf32>
    %82 = vector.extract_strided_slice %63 {offsets = [2, 1, 0], sizes = [8, 16, 8], strides = [1, 1, 1]} : vector<10x24x8xf32> to vector<8x16x8xf32>
    %83 = vector.extract_strided_slice %63 {offsets = [2, 2, 0], sizes = [8, 16, 8], strides = [1, 1, 1]} : vector<10x24x8xf32> to vector<8x16x8xf32>
    %84 = tpu.concatenate %81, %82, %83 in 2 : vector<8x16x8xf32>, vector<8x16x8xf32>, vector<8x16x8xf32> -> vector<8x16x24xf32>
    %85 = vector.shape_cast %84 : vector<8x16x24xf32> to vector<128x24xf32>
    %c2_69 = arith.constant 2 : index
    %c0_70 = arith.constant 0 : index
    %c0_71 = arith.constant 0 : index
    %86 = vector.load %arg7[%c2_69, %c0_70, %c0_71] : memref<3x24x8xf32, #tpu.memory_space<vmem>>, vector<1x24x8xf32>
    %87 = vector.shape_cast %86 : vector<1x24x8xf32> to vector<24x8xf32>
    %cst_72 = arith.constant dense<0.000000e+00> : vector<128x8xf32>
    %88 = tpu.matmul %85, %87, %cst_72 {dimension_numbers = #tpu.dot_dimension_numbers<[1], [0], [0], [1], [0, 0, 1, 1], [], []>} : vector<128x24xf32>, vector<24x8xf32>, vector<128x8xf32> -> vector<128x8xf32>
    %89 = arith.addf %80, %88 : vector<128x8xf32>
    %c0_73 = arith.constant 0 : index
    %c0_74 = arith.constant 0 : index
    %90 = vector.load %arg8[%c0_73, %c0_74] : memref<1x8xf32, #tpu.memory_space<vmem>>, vector<1x8xf32>
    %91 = vector.broadcast %90 : vector<1x8xf32> to vector<128x8xf32>
    %92 = arith.addf %89, %91 : vector<128x8xf32>
    %cst_75 = arith.constant 0.000000e+00 : f32
    %93 = vector.broadcast %cst_75 : f32 to vector<128x8xf32>
    %94 = arith.maximumf %92, %93 : vector<128x8xf32>
    %95 = vector.shape_cast %94 : vector<128x8xf32> to vector<1x8x16x8xf32>
    %c0_76 = arith.constant 0 : index
    %c0_77 = arith.constant 0 : index
    %c0_78 = arith.constant 0 : index
    %c0_79 = arith.constant 0 : index
    %96 = vector.load %arg9[%c0_76, %c0_77, %c0_78, %c0_79] : memref<1x8x16x8xf32, #tpu.memory_space<vmem>>, vector<1x8x16x8xf32>
    tpu.vector_store %arg9[%c0_76, %c0_77, %c0_78, %c0_79], %95 {strides = array<i32>} : memref<1x8x16x8xf32, #tpu.memory_space<vmem>>, vector<1x8x16x8xf32>,
    return
  }
  func.func @transform_0(%arg0: i32, %arg1: i32) -> (i32, i32, i32, i32) {
    %c0_i32 = arith.constant 0 : i32
    %c0_i32_0 = arith.constant 0 : i32
    %c0_i32_1 = arith.constant 0 : i32
    return %arg0, %arg1, %c0_i32, %c0_i32_0 : i32, i32, i32, i32
  }
  func.func @transform_1(%arg0: i32, %arg1: i32) -> (i32, i32, i32, i32) {
    %c4_i32 = arith.constant 4 : i32
    %0 = arith.muli %arg1, %c4_i32 : i32
    %c1_i32 = arith.constant 1 : i32
    %1 = arith.subi %0, %c1_i32 : i32
    %c0_i32 = arith.constant 0 : i32
    %2 = arith.maxsi %1, %c0_i32 : i32
    %c0_i32_0 = arith.constant 0 : i32
    %c0_i32_1 = arith.constant 0 : i32
    %c0_i32_2 = arith.constant 0 : i32
    return %arg0, %2, %c0_i32_0, %c0_i32_1 : i32, i32, i32, i32
  }
  func.func @transform_2(%arg0: i32, %arg1: i32) -> (i32, i32, i32, i32) {
    %c1_i32 = arith.constant 1 : i32
    %0 = arith.addi %arg1, %c1_i32 : i32
    %c4_i32 = arith.constant 4 : i32
    %1 = arith.muli %0, %c4_i32 : i32
    %c7_i32 = arith.constant 7 : i32
    %2 = arith.minsi %1, %c7_i32 : i32
    %c0_i32 = arith.constant 0 : i32
    %c0_i32_0 = arith.constant 0 : i32
    %c0_i32_1 = arith.constant 0 : i32
    return %arg0, %2, %c0_i32, %c0_i32_0 : i32, i32, i32, i32
  }
  func.func @transform_3(%arg0: i32, %arg1: i32) -> (i32, i32, i32) {
    %c0_i32 = arith.constant 0 : i32
    %c0_i32_0 = arith.constant 0 : i32
    %c0_i32_1 = arith.constant 0 : i32
    %c0_i32_2 = arith.constant 0 : i32
    return %c0_i32, %c0_i32_0, %c0_i32_1 : i32, i32, i32
  }
  func.func @transform_4(%arg0: i32, %arg1: i32) -> (i32, i32) {
    %c0_i32 = arith.constant 0 : i32
    %c0_i32_0 = arith.constant 0 : i32
    %c0_i32_1 = arith.constant 0 : i32
    return %c0_i32, %c0_i32_0 : i32, i32
  }
  func.func @transform_5(%arg0: i32, %arg1: i32) -> (i32, i32, i32) {
    %c0_i32 = arith.constant 0 : i32
    %c0_i32_0 = arith.constant 0 : i32
    %c0_i32_1 = arith.constant 0 : i32
    %c0_i32_2 = arith.constant 0 : i32
    return %c0_i32, %c0_i32_0, %c0_i32_1 : i32, i32, i32
  }
  func.func @transform_6(%arg0: i32, %arg1: i32) -> (i32, i32) {
    %c0_i32 = arith.constant 0 : i32
    %c0_i32_0 = arith.constant 0 : i32
    %c0_i32_1 = arith.constant 0 : i32
    return %c0_i32, %c0_i32_0 : i32, i32
  }
  func.func @transform_7(%arg0: i32, %arg1: i32) -> (i32, i32, i32, i32) {
    %c0_i32 = arith.constant 0 : i32
    %c0_i32_0 = arith.constant 0 : i32
    %c0_i32_1 = arith.constant 0 : i32
    return %arg0, %arg1, %c0_i32, %c0_i32_0 : i32, i32, i32, i32
  }
}

</mosaic_0001>

<bundles_post_ra>
// kernel: tpu_custom_call.1
= control target key start
LH: loop header
LB: loop body
LE: loop exit
PB: predicated region body
PF: predicated region fallthrough
CT: control target
= control target key end

     0   :  { %s3403_s24 = smov 0   ;;  %s3405_s25 = smov 0   ;;  %s4532_s0 = inlined_call_operand.vmem [shape: f32[2,16,16,4], index: 0, kind: input, shape index: {}]   ;;  %s4533_s1 = inlined_call_operand.vmem [shape: f32[2,16,16,4], index: 1, kind: input, shape index: {}]   ;;  %s4534_s2 = inlined_call_operand.vmem [shape: f32[2,16,16,4], index: 2, kind: input, shape index: {}]   ;;  %s4535_s3 = inlined_call_operand.vmem [shape: f32[3,12,8], index: 3, kind: input, shape index: {}]   ;;  %s4536_s4 = inlined_call_operand.vmem [shape: f32[1,8], index: 4, kind: input, shape index: {}]   ;;  %s4537_s5 = inlined_call_operand.vmem [shape: f32[3,24,8], index: 5, kind: input, shape index: {}]   ;;  %s4538_s6 = inlined_call_operand.vmem [shape: f32[1,8], index: 6, kind: input, shape index: {}]   ;;  %s4539_s7 = inlined_call_operand.vmem [shape: f32[2,16,16,8], index: 7, kind: output, shape index: {}]  }
   0x1   :  { %s3407_s26 = smov 0   ;;  %s3409_s27 = smov 0  }
   0x2   :  { %s3411_s28 = smov 0  }
   0x3 LB: > { %s26_s29 = sadd.s32 1, %s3344_s26  ;;  %s29_s30 = sadd.s32 1, %s3348_s27  ;;  %s3352_s28 = sphi %s3411_s28, %s17_s28   ;;  %s3348_s27 = sphi %s3409_s27, %s4546_s27   ;;  %s3344_s26 = sphi %s3407_s26, %s4545_s26   ;;  %s3340_s25 = sphi %s3405_s25, %s4544_s25   ;;  %s3336_s24 = sphi %s3403_s24, %s4543_s24  }
   0x4   : > { %p27_p0 = scmp.ge.s32.totalorder %s26_s29, 2  ;;  %p2691_p1 = scmp.ge.s32.totalorder %s3352_s28, 1 }
   0x5   : > { %p327_p2 = scmp.lt.s32.totalorder %s3352_s28, 5 }
   0x6   : > { %s4548_s29 = smov (%p27_p0, %s26_s29), 0  ;;  %s4550_s30 = smov (!%p27_p0, %s29_s30), %s3348_s27 }
   0x7   : > { %p328_p3 = pnand %p2691_p1, %p327_p2  ;;  %p31_p4 = scmp.ge.s32.totalorder %s4550_s30, 2 }
   0x8   : > { %vm457_vm0 = vcmask (!%p328_p3), 24576   ;;  %s2692_s8 = sshll.u32 (!%p328_p3), %s3336_s24, 3  ;;  %p398_p5 = scmp.lt.s32.totalorder (!%p328_p3), %s3340_s25, 1  ;;  %v3354_v0 = vmov (!%p328_p3), 0.0   ;;  %vm486_vm1 = vcmask (!%p328_p3), 31744  }
   0x9   : > { %s4552_s30 = smov (%p31_p4, %s4550_s30), 0  ;;  %331 = sbr.rel (%p328_p3) target bundleno = 997 (0x3e5), region = 48 }
   0xa   : > { %458 = vst.msk [vmem:[#allocation2] sm:$0x1] (!%p328_p3), %vm457_vm0, %v3354_v0  ;;  %459 = vst.msk [vmem:[#allocation2 + $0x18] sm:$0x1] (!%p328_p3), %vm457_vm0, %v3354_v0  ;;  %p400_p6 = scmp.lt.s32.totalorder (!%p328_p3), %s2692_s8, 15  ;;  %s2696_s9 = sshll.u32 (!%p328_p3), %s3336_s24, 2 }
   0xb   : > { %460 = vst.msk [vmem:[#allocation2 + $0x30] sm:$0x1] (!%p328_p3), %vm457_vm0, %v3354_v0  ;;  %461 = vst.msk [vmem:[#allocation2 + $0x48] sm:$0x1] (!%p328_p3), %vm457_vm0, %v3354_v0  ;;  %s2697_s11 = sadd.s32 (!%p328_p3), 4294967295, %s2696_s9  ;;  %s2845_s14 = sadd.s32 (!%p328_p3), 4, %s2696_s9 }
   0xc   : > { %462 = vst.msk [vmem:[#allocation2 + $0x60] sm:$0x1] (!%p328_p3), %vm457_vm0, %v3354_v0  ;;  %463 = vst.msk [vmem:[#allocation2 + $0x78] sm:$0x1] (!%p328_p3), %vm457_vm0, %v3354_v0  ;;  %p410_p7 = scmp.gt.s32.totalorder (!%p328_p3), %s2697_s11, 0  ;;  %p429_p8 = scmp.lt.s32.totalorder (!%p328_p3), %s2845_s14, 7 }
   0xd   : > { %464 = vst.msk [vmem:[#allocation2 + $0x90] sm:$0x1] (!%p328_p3), %vm457_vm0, %v3354_v0  ;;  %465 = vst.msk [vmem:[#allocation2 + $0xa8] sm:$0x1] (!%p328_p3), %vm457_vm0, %v3354_v0  ;;  %p2711_p11 = scmp.ne.s32.totalorder (!%p328_p3), %s3336_s24, 0 }
   0xe   : > { %466 = vst.msk [vmem:[#allocation2 + $0xc0] sm:$0x1] (!%p328_p3), %vm457_vm0, %v3354_v0  ;;  %467 = vst.msk [vmem:[#allocation2 + $0xd8] sm:$0x1] (!%p328_p3), %vm457_vm0, %v3354_v0 }
   0xf   : > { %468 = vst.msk [vmem:[#allocation2 + $0xf0] sm:$0x1] (!%p328_p3), %vm457_vm0, %v3354_v0  ;;  %469 = vst.msk [vmem:[#allocation2 + $0x108] sm:$0x1] (!%p328_p3), %vm457_vm0, %v3354_v0 }
  0x10   : > { %470 = vst.msk [vmem:[#allocation2 + $0x11] sm:$0x1] %vm457_vm0, %v3354_v0  ;;  %471 = vst.msk [vmem:[#allocation2 + $0x29] sm:$0x1] %vm457_vm0, %v3354_v0  ;;  %s4554_s25 = smov (!%p398_p5, %s3340_s25), 1  ;;  %s4556_s8 = smov (!%p400_p6, %s2692_s8), 15 }
  0x11   : > { %472 = vst.msk [vmem:[#allocation2 + $0x41] sm:$0x1] %vm457_vm0, %v3354_v0  ;;  %473 = vst.msk [vmem:[#allocation2 + $0x59] sm:$0x1] %vm457_vm0, %v3354_v0  ;;  %s3495_s10 = sshll.u32 %s4554_s25, 5  ;;  %s2693_s12 = sshll.u32 %s4556_s8, 1 }
  0x12   : > { %474 = vst.msk [vmem:[#allocation2 + $0x71] sm:$0x1] %vm457_vm0, %v3354_v0  ;;  %475 = vst.msk [vmem:[#allocation2 + $0x89] sm:$0x1] %vm457_vm0, %v3354_v0  ;;  %s404_s13 = sadd.s32 %s3495_s10, %s2693_s12  ;;  %s4558_s11 = smov (!%p410_p7, %s2697_s11), 0  ;;  %v3355_v25 = vmov (!%p2711_p11), 0.0  }
  0x13   : > { %476 = vst.msk [vmem:[#allocation2 + $0xa1] sm:$0x1] %vm457_vm0, %v3354_v0  ;;  %477 = vst.msk [vmem:[#allocation2 + $0xb9] sm:$0x1] %vm457_vm0, %v3354_v0  ;;  %s2695_s15 = sshll.u32 %s404_s13, 3  ;;  %s4560_s14 = smov (!%p429_p8, %s2845_s14), 7 }
  0x14   : > { %478 = vst.msk [vmem:[#allocation2 + $0xd1] sm:$0x1] %vm457_vm0, %v3354_v0  ;;  %479 = vst.msk [vmem:[#allocation2 + $0xe9] sm:$0x1] %vm457_vm0, %v3354_v0  ;;  %s3501_s18 = scalar_lea.vmem %s4532_s0, %s2695_s15  ;;  %s3506_s21 = scalar_lea.vmem %s4539_s7, %s2695_s15 }
  0x15   : > { %480 = vst.msk [vmem:[#allocation2 + $0x101] sm:$0x1] %vm457_vm0, %v3354_v0  ;;  %481 = vst.msk [vmem:[#allocation2 + $0x119] sm:$0x1] %vm457_vm0, %v3354_v0  ;;  %v491_v1 = vld [vmem:[%s3501_s18] sm:$0xff]  ;;  %v492_v2 = vld [vmem:[%s3501_s18 + $0x8] sm:$0xff] }
  0x16   : > { %v493_v3 = vld [vmem:[%s3501_s18 + $0x10] sm:$0xff]  ;;  %508 = vst.msk [vmem:[#allocation2 + $0x31] sm:$0xff] %vm486_vm1, %v491_v1  ;;  %509 = vst.msk [vmem:[#allocation2 + $0x39] sm:$0xff] %vm486_vm1, %v492_v2  ;;  %v494_v4 = vld [vmem:[%s3501_s18 + $0x18] sm:$0xff]  ;;  %s2698_s22 = sshll.u32 %s4558_s11, 1  ;;  %s2703_s25 = sshll.u32 %s4560_s14, 1 }
  0x17   : > { %510 = vst.msk [vmem:[#allocation2 + $0x49] sm:$0xff] %vm486_vm1, %v493_v3  ;;  %v495_v5 = vld [vmem:[%s3501_s18 + $0x20] sm:$0xff]  ;;  %v496_v6 = vld [vmem:[%s3501_s18 + $0x28] sm:$0xff]  ;;  %511 = vst.msk [vmem:[#allocation2 + $0x51] sm:$0xff] %vm486_vm1, %v494_v4  ;;  %p3528_p9 = scmp.lt.s32.totalorder %s2698_s22, 15  ;;  %p434_p10 = scmp.lt.s32.totalorder %s2703_s25, 15 }
  0x18   : > { %512 = vst.msk [vmem:[#allocation2 + $0x61] sm:$0xff] %vm486_vm1, %v495_v5  ;;  %513 = vst.msk [vmem:[#allocation2 + $0x69] sm:$0xff] %vm486_vm1, %v496_v6  ;;  %v497_v7 = vld [vmem:[%s3501_s18 + $0x30] sm:$0xff]  ;;  %v498_v8 = vld [vmem:[%s3501_s18 + $0x38] sm:$0xff] }
  0x19   : > { %v499_v9 = vld [vmem:[%s3501_s18 + $0x40] sm:$0xff]  ;;  %514 = vst.msk [vmem:[#allocation2 + $0x79] sm:$0xff] %vm486_vm1, %v497_v7  ;;  %515 = vst.msk [vmem:[#allocation2 + $0x81] sm:$0xff] %vm486_vm1, %v498_v8  ;;  %v500_v10 = vld [vmem:[%s3501_s18 + $0x48] sm:$0xff]  ;;  %s4562_s22 = smov (!%p3528_p9, %s2698_s22), 15  ;;  %s4564_s25 = smov (!%p434_p10, %s2703_s25), 15 }
  0x1a   : > { %516 = vst.msk [vmem:[#allocation2 + $0x91] sm:$0xff] %vm486_vm1, %v499_v9  ;;  %v501_v11 = vld [vmem:[%s3501_s18 + $0x50] sm:$0xff]  ;;  %v502_v12 = vld [vmem:[%s3501_s18 + $0x58] sm:$0xff]  ;;  %517 = vst.msk [vmem:[#allocation2 + $0x99] sm:$0xff] %vm486_vm1, %v500_v10  ;;  %s2699_s8 = sshll.u32 %s4562_s22, 1  ;;  %s2704_s11 = sshll.u32 %s4564_s25, 1 }
  0x1b   : > { %518 = vst.msk [vmem:[#allocation2 + $0xa9] sm:$0xff] %vm486_vm1, %v501_v11  ;;  %519 = vst.msk [vmem:[#allocation2 + $0xb1] sm:$0xff] %vm486_vm1, %v502_v12  ;;  %v503_v13 = vld [vmem:[%s3501_s18 + $0x60] sm:$0xff]  ;;  %v504_v14 = vld [vmem:[%s3501_s18 + $0x68] sm:$0xff]  ;;  %s419_s9 = sadd.s32 %s2699_s8, %s3495_s10  ;;  %s438_s13 = sadd.s32 %s2704_s11, %s3495_s10 }
  0x1c   : > { %v505_v15 = vld [vmem:[%s3501_s18 + $0x70] sm:$0xff]  ;;  %520 = vst.msk [vmem:[#allocation2 + $0xc1] sm:$0xff] %vm486_vm1, %v503_v13  ;;  %521 = vst.msk [vmem:[#allocation2 + $0xc9] sm:$0xff] %vm486_vm1, %v504_v14  ;;  %v506_v16 = vld [vmem:[%s3501_s18 + $0x78] sm:$0xff]  ;;  %s2701_s12 = sshll.u32 %s419_s9, 3  ;;  %s2706_s17 = sshll.u32 %s438_s13, 3 }
  0x1d   : > { %522 = vst.msk [vmem:[#allocation2 + $0xd9] sm:$0xff] %vm486_vm1, %v505_v15  ;;  %523 = vst.msk [vmem:[#allocation2 + $0xe1] sm:$0xff] %vm486_vm1, %v506_v16  ;;  %s421_s16 = scalar_lea.vmem %s4533_s1, %s2701_s12  ;;  %s440_s18 = scalar_lea.vmem %s4534_s2, %s2706_s17 }
  0x1e   : > { %v482_v17 = vld [vmem:[%s421_s16] sm:$0xff]  ;;  %v483_v18 = vld [vmem:[%s421_s16 + $0x8] sm:$0xff]  ;;  %v484_v19 = vld [vmem:[%s421_s16 + $0x10] sm:$0xff]  ;;  %536 = sbr.rel (%p2711_p11) target bundleno = 37 (0x25), region = 52 }
  0x1f   : > { %487 = vst.msk [vmem:[#allocation2 + $0x1] sm:$0xff] %vm486_vm1, %v482_v17  ;;  %488 = vst.msk [vmem:[#allocation2 + $0x9] sm:$0xff] %vm486_vm1, %v483_v18  ;;  %v485_v20 = vld [vmem:[%s421_s16 + $0x18] sm:$0xff]  ;;  %v524_v21 = vld [vmem:[%s440_s18] sm:$0xff] }
  0x20   : > { %489 = vst.msk [vmem:[#allocation2 + $0x19] sm:$0xff] %vm486_vm1, %v484_v19  ;;  %v525_v22 = vld [vmem:[%s440_s18 + $0x8] sm:$0xff]  ;;  %490 = vst.msk [vmem:[#allocation2 + $0x21] sm:$0xff] %vm486_vm1, %v485_v20  ;;  %v526_v23 = vld [vmem:[%s440_s18 + $0x10] sm:$0xff] }
  0x21   : > { %529 = vst.msk [vmem:[#allocation2 + $0xf1] sm:$0xff] %vm486_vm1, %v524_v21  ;;  %530 = vst.msk [vmem:[#allocation2 + $0xf9] sm:$0xff] %vm486_vm1, %v525_v22  ;;  %v527_v24 = vld [vmem:[%s440_s18 + $0x18] sm:$0xff] }
  0x22   : > { %531 = vst.msk [vmem:[#allocation2 + $0x109] sm:$0xff] %vm486_vm1, %v526_v23  ;;  %532 = vst.msk [vmem:[#allocation2 + $0x111] sm:$0xff] %vm486_vm1, %v527_v24 }
  0x23   : > { %537 = vst.msk [vmem:[#allocation2 + $0x1] sm:$0xff] (!%p2711_p11), %vm486_vm1, %v3355_v25  ;;  %538 = vst.msk [vmem:[#allocation2 + $0x9] sm:$0xff] (!%p2711_p11), %vm486_vm1, %v3355_v25 }
  0x24   : > { %539 = vst.msk [vmem:[#allocation2 + $0x19] sm:$0xff] (!%p2711_p11), %vm486_vm1, %v3355_v25  ;;  %540 = vst.msk [vmem:[#allocation2 + $0x21] sm:$0xff] (!%p2711_p11), %vm486_vm1, %v3355_v25 }
  0x25 PF: > { %p2712_p12 = scmp.ne.s32.totalorder %s3336_s24, 1 }
  0x26   : > { %v3356_v26 = vmov (!%p2712_p12), 0.0  }
  0x27   : > { %544 = sbr.rel (%p2712_p12) target bundleno = 46 (0x2e), region = 56  ;;  %545 = vst.msk [vmem:[#allocation2 + $0xf1] sm:$0xff] (!%p2712_p12), %vm486_vm1, %v3356_v26  ;;  %546 = vst.msk [vmem:[#allocation2 + $0xf9] sm:$0xff] (!%p2712_p12), %vm486_vm1, %v3356_v26 }
  0x28   : > { %547 = vst.msk [vmem:[#allocation2 + $0x109] sm:$0xff] (!%p2712_p12), %vm486_vm1, %v3356_v26  ;;  %548 = vst.msk [vmem:[#allocation2 + $0x111] sm:$0xff] (!%p2712_p12), %vm486_vm1, %v3356_v26 }
  0x2e PF: > { %v3582_v27 = vld [vmem:[#allocation2 + $0x18] sm:$0xff]  ;;  %v3584_v28 = vld [vmem:[#allocation2 + $0x20] sm:$0xff]  ;;  %vm726_vm2 = vcmask 1045504   ;;  %vm615_vm3 = vcmask 1046528   ;;  %v554_v33 = vld [vmem:[#allocation2 + $0x28] sm:$0xff]  ;;  %s3357_s10 = smov 8  }
  0x2f   : > { %v732_v29 = vrot.slane %v3582_v27, 2  ;;  %v733_v30 = vrot.slane %v3584_v28, 2  ;;  %v621_v31 = vrot.slane %v3582_v27, 1  ;;  %v622_v32 = vrot.slane %v3584_v28, 1  ;;  %v3590_v34 = vld [vmem:[#allocation2 + $0x38] sm:$0xff]  ;;  %v557_v37 = vld [vmem:[#allocation2 + $0x40] sm:$0xff] }
  0x30   : > { %v735_v35 = vrot.slane %v554_v33, 2  ;;  %v624_v36 = vrot.slane %v554_v33, 1  ;;  %v3592_v38 = vld [vmem:[#allocation2 + $0x30] sm:$0xff]  ;;  %s3358_s22 = smov 4   ;;  %v627_v41 = vrot.slane %v3590_v34, 1  ;;  %v629_v44 = vrot.slane %v557_v37, 1 }
  0x31   : > { %v734_v39 = vsel %vm726_vm2, %v732_v29, %v733_v30  ;;  %v623_v40 = vsel %vm615_vm3, %v621_v31, %v622_v32  ;;  %v626_v45 = vrot.slane %v3592_v38, 1  ;;  %v738_v46 = vrot.slane %v3590_v34, 2  ;;  %v3608_v51 = vld [vmem:[#allocation2 + $0x50] sm:$0xff]  ;;  %v560_v52 = vld [vmem:[#allocation2 + $0x58] sm:$0xff]  ;;  %v3610_v53 = vld [vmem:[#allocation2 + $0x48] sm:$0xff] }
  0x32   : > { %781 = vrot.lane.b32.xlu1 %v734_v39, %s3357_s10  ;;  %670 = vrot.lane.b32.xlu0 %v623_v40, %s3358_s22  ;;  %v736_v42 = vsel %vm726_vm2, %v733_v30, %v735_v35  ;;  %v625_v43 = vsel %vm615_vm3, %v622_v32, %v624_v36  ;;  %v630_v47 = vsel %vm615_vm3, %v627_v41, %v629_v44  ;;  %v740_v49 = vrot.slane %v557_v37, 2  ;;  %v3624_v1 = vld [vmem:[#allocation2 + $0x68] sm:$0xff]  ;;  %v563_v2 = vld [vmem:[#allocation2 + $0x70] sm:$0xff]  ;;  %v3626_v3 = vld [vmem:[#allocation2 + $0x60] sm:$0xff] }
  0x33   : > { %v628_v48 = vsel %vm615_vm3, %v626_v45, %v627_v41  ;;  %v737_v50 = vrot.slane %v3592_v38, 2  ;;  %v632_v54 = vrot.slane %v3608_v51, 1  ;;  %v634_v57 = vrot.slane %v560_v52, 1  ;;  %v2713_v9 = vld [vmem:[%s4535_s3 + $0x10] sm:$0xff]  ;;  %v2714_v10 = vld [vmem:[%s4535_s3 + $0x18] sm:$0xf] }
  0x34   : > { %v741_v55 = vsel %vm726_vm2, %v738_v46, %v740_v49  ;;  %v631_v58 = vrot.slane %v3610_v53, 1  ;;  %v743_v59 = vrot.slane %v3608_v51, 2  ;;  %v745_v62 = vrot.slane %v560_v52, 2  ;;  %v3646_v16 = vld [vmem:[#allocation2 + $0x80] sm:$0xff]  ;;  %v566_v18 = vld [vmem:[#allocation2 + $0x88] sm:$0xff]  ;;  %v3648_v19 = vld [vmem:[#allocation2 + $0x78] sm:$0xff] }
  0x35   : > { %v739_v56 = vsel %vm726_vm2, %v737_v50, %v738_v46  ;;  %v635_v60 = vsel %vm615_vm3, %v632_v54, %v634_v57  ;;  %v742_v63 = vrot.slane %v3610_v53, 2  ;;  %v637_v4 = vrot.slane %v3624_v1, 1  ;;  %v878_v22 = vld [vmem:[%s4535_s3] sm:$0xff]  ;;  %v879_v23 = vld [vmem:[%s4535_s3 + $0x8] sm:$0xf]  ;;  %v3682_v37 = vld [vmem:[#allocation2 + $0x98] sm:$0xff] }
  0x36   : > { %783 = vrot.lane.b32.xlu1 %v736_v42, %s3357_s10  ;;  %672 = vrot.lane.b32.xlu0 %v625_v43, %s3358_s22  ;;  %v633_v61 = vsel %vm615_vm3, %v631_v58, %v632_v54  ;;  %v746_v5 = vsel %vm726_vm2, %v743_v59, %v745_v62  ;;  %v639_v7 = vrot.slane %v563_v2, 1  ;;  %v636_v8 = vrot.slane %v3626_v3, 1  ;;  %v569_v39 = vld [vmem:[#allocation2 + $0xa0] sm:$0xff]  ;;  %v3687_v40 = vld [vmem:[#allocation2 + $0x90] sm:$0xff]  ;;  %v572_v54 = vld [vmem:[#allocation2 + $0xb8] sm:$0xff] }
  0x37   : > { %v744_v6 = vsel %vm726_vm2, %v742_v63, %v743_v59  ;;  %v748_v11 = vrot.slane %v3624_v1, 2  ;;  %v750_v12 = vrot.slane %v563_v2, 2  ;;  %v747_v13 = vrot.slane %v3626_v3, 2  ;;  %v3701_v52 = vld [vmem:[#allocation2 + $0xb0] sm:$0xff] }
  0x38   : > { %v640_v14 = vsel %vm615_vm3, %v637_v4, %v639_v7  ;;  %v638_v15 = vsel %vm615_vm3, %v636_v8, %v637_v4  ;;  %vm973_vm4 = vcmask 1043456   ;;  %v3161_v17 = vpack.c.bf16 %v2714_v10, %v2713_v9  ;;  %v3719_v7 = vld [vmem:[#allocation2] sm:$0xff] }
  0x39   : > { %vm3359_vm5 = vmmov 1   ;;  %v642_v21 = vrot.slane %v3646_v16, 1  ;;  %v751_v24 = vsel %vm726_vm2, %v748_v11, %v750_v12  ;;  %v749_v25 = vsel %vm726_vm2, %v747_v13, %v748_v11 }
  0x3a   : > { %676 = vrot.lane.b32.xlu1 %v630_v47, %s3358_s22  ;;  %674 = vrot.lane.b32.xlu0 %v628_v48, %s3358_s22  ;;  %vm3650_vm6 = vmpackc.low %vm973_vm4, %vm3359_vm5  ;;  %v644_v26 = vrot.slane %v566_v18, 1  ;;  %v641_v29 = vrot.slane %v3648_v19, 1  ;;  %v3674_v30 = vpack.c.bf16 %v879_v23, %v878_v22  ;;  %v753_v31 = vrot.slane %v3646_v16, 2  ;;  %v3735_v22 = vld [vmem:[#allocation2 + $0xc8] sm:$0xff]  ;;  %v575_v23 = vld [vmem:[#allocation2 + $0xd0] sm:$0xff] }
  0x3b   : > { %3163 = vmatprep.subr.msk.bf16.mxu0 %vm3650_vm6, %v3161_v17  ;;  %3191 = vmatprep.subr.msk.bf16.mxu1 %vm3650_vm6, %v3161_v17  ;;  %v755_v35 = vrot.slane %v566_v18, 2  ;;  %v752_v36 = vrot.slane %v3648_v19, 2  ;;  %v647_v41 = vrot.slane %v3682_v37, 1  ;;  %v649_v44 = vrot.slane %v569_v39, 1 }
  0x3c   : > { %3166 = vmatpush3.bf16.msk.msra.mxu0 %vm3650_vm6, %v3161_v17  ;;  %3192 = vmatpush3.bf16.msk.msra.mxu1 %vm3650_vm6, %v3161_v17  ;;  %v645_v32 = vsel %vm615_vm3, %v642_v21, %v644_v26  ;;  %v643_v33 = vsel %vm615_vm3, %v641_v29, %v642_v21  ;;  %v646_v45 = vrot.slane %v3687_v40, 1  ;;  %v758_v46 = vrot.slane %v3682_v37, 2  ;;  %v3733_v21 = vld [vmem:[#allocation2 + $0xc0] sm:$0xff] }
  0x3d   : > { %3169 = vmatprep.subr.msk.bf16.mxu0 %vm3650_vm6, %v3674_v30  ;;  %v756_v42 = vsel %vm726_vm2, %v753_v31, %v755_v35  ;;  %v754_v43 = vsel %vm726_vm2, %v752_v36, %v753_v31  ;;  %v650_v47 = vsel %vm615_vm3, %v647_v41, %v649_v44  ;;  %v760_v49 = vrot.slane %v569_v39, 2 }
  0x3e   : > { %787 = vrot.lane.b32.xlu1 %v741_v55, %s3357_s10  ;;  %785 = vrot.lane.b32.xlu0 %v739_v56, %s3357_s10  ;;  %v648_v48 = vsel %vm615_vm3, %v646_v45, %v647_v41  ;;  %v757_v50 = vrot.slane %v3687_v40, 2  ;;  %v3703_v55 = vld [vmem:[#allocation2 + $0xa8] sm:$0xff]  ;;  %v652_v56 = vrot.slane %v3701_v52, 1  ;;  %v654_v59 = vrot.slane %v572_v54, 1  ;;  %v3749_v41 = vld [vmem:[#allocation2 + $0xd8] sm:$0xff] }
  0x3f   : > { %v761_v57 = vsel %vm726_vm2, %v758_v46, %v760_v49  ;;  %v765_v2 = vrot.slane %v572_v54, 2  ;;  %v762_v4 = vrot.slane %v3703_v55, 2  ;;  %v616_v12 = vrot.slane %v3719_v7, 1 }
  0x40   : > { %v759_v58 = vsel %vm726_vm2, %v757_v50, %v758_v46  ;;  %v655_v62 = vsel %vm615_vm3, %v652_v56, %v654_v59  ;;  %v727_v18 = vrot.slane %v3719_v7, 2  ;;  %v657_v29 = vrot.slane %v3735_v22, 1  ;;  %v3767_v59 = vld [vmem:[#allocation2 + $0xf8] sm:$0xff] }
  0x41   : > { %v659_v31 = vrot.slane %v575_v23, 1  ;;  %v768_v36 = vrot.slane %v3735_v22, 2  ;;  %v770_v39 = vrot.slane %v575_v23, 2  ;;  %v661_v44 = vrot.slane %v3749_v41, 1 }
  0x42   : > { %680 = vrot.lane.b32.xlu1 %v635_v60, %s3358_s22  ;;  %678 = vrot.lane.b32.xlu0 %v633_v61, %s3358_s22  ;;  %v651_v60 = vrot.slane %v3703_v55, 1  ;;  %v763_v61 = vrot.slane %v3701_v52, 2  ;;  %v772_v49 = vrot.slane %v3749_v41, 2  ;;  %vm857_vm7 = vcmask 64512  }
  0x43   : > { %v660_v35 = vsel %vm615_vm3, %v657_v29, %v659_v31  ;;  %v771_v46 = vsel %vm726_vm2, %v768_v36, %v770_v39  ;;  %vm912_vm8 = vcmask 97280   ;;  %vm1589_vm9 = vcmask 57344  }
  0x44   : > { %v653_v63 = vsel %vm615_vm3, %v651_v60, %v652_v56  ;;  %v766_v9 = vsel %vm726_vm2, %v763_v61, %v765_v2  ;;  %v764_v10 = vsel %vm726_vm2, %v762_v4, %v763_v61  ;;  %v581_v60 = vld [vmem:[#allocation2 + $0x100] sm:$0xff]  ;;  %v884_v2 = vrot.slane %v3767_v59, 1  ;;  %1590 = vst.msk [vmem:[#allocation3] sm:$0x1] %vm1589_vm9, %v3354_v0  ;;  %1591 = vst.msk [vmem:[#allocation3 + $0x18] sm:$0x1] %vm1589_vm9, %v3354_v0 }
  0x45   : > { %v886_v4 = vrot.slane %v581_v60, 1  ;;  %1592 = vst.msk [vmem:[#allocation3 + $0x30] sm:$0x1] %vm1589_vm9, %v3354_v0  ;;  %1593 = vst.msk [vmem:[#allocation3 + $0x48] sm:$0x1] %vm1589_vm9, %v3354_v0 }
  0x46   : > { %791 = vrot.lane.b32.xlu1 %v746_v5, %s3357_s10  ;;  %789 = vrot.lane.b32.xlu0 %v744_v6, %s3357_s10  ;;  %v3717_v5 = vld [vmem:[#allocation2 + $0x8] sm:$0xff]  ;;  %v551_v6 = vld [vmem:[#allocation2 + $0x10] sm:$0xff]  ;;  %1594 = vst.msk [vmem:[#allocation3 + $0x60] sm:$0x1] %vm1589_vm9, %v3354_v0  ;;  %1595 = vst.msk [vmem:[#allocation3 + $0x78] sm:$0x1] %vm1589_vm9, %v3354_v0 }
  0x47   : > { %v617_v8 = vrot.slane %v3717_v5, 1  ;;  %v619_v11 = vrot.slane %v551_v6, 1  ;;  %v728_v13 = vrot.slane %v3717_v5, 2  ;;  %v730_v17 = vrot.slane %v551_v6, 2  ;;  %1596 = vst.msk [vmem:[#allocation3 + $0x90] sm:$0x1] %vm1589_vm9, %v3354_v0 }
  0x48   : > { %1597 = vst.msk [vmem:[#allocation3 + $0xa8] sm:$0x1] %vm1589_vm9, %v3354_v0  ;;  %1598 = vst.msk [vmem:[#allocation3 + $0xc0] sm:$0x1] %vm1589_vm9, %v3354_v0 }
  0x49   : > { %v729_v26 = vsel %vm726_vm2, %v727_v18, %v728_v13  ;;  %1599 = vst.msk [vmem:[#allocation3 + $0xd8] sm:$0x1] %vm1589_vm9, %v3354_v0  ;;  %1600 = vst.msk [vmem:[#allocation3 + $0x11] sm:$0x1] %vm1589_vm9, %v3354_v0 }
  0x4a   : > { %684 = vrot.lane.b32.xlu1 %v640_v14, %s3358_s22  ;;  %682 = vrot.lane.b32.xlu0 %v638_v15, %s3358_s22  ;;  %v620_v14 = vsel %vm615_vm3, %v617_v8, %v619_v11  ;;  %v618_v15 = vsel %vm615_vm3, %v616_v12, %v617_v8  ;;  %v897_v11 = vrot.slane %v581_v60, 2  ;;  %v3781_v12 = vld [vmem:[#allocation2 + $0x108] sm:$0xff]  ;;  %1601 = vst.msk [vmem:[#allocation3 + $0x29] sm:$0x1] %vm1589_vm9, %v3354_v0  ;;  %1602 = vst.msk [vmem:[#allocation3 + $0x41] sm:$0x1] %vm1589_vm9, %v3354_v0 }
  0x4b   : > { %1603 = vst.msk [vmem:[#allocation3 + $0x59] sm:$0x1] %vm1589_vm9, %v3354_v0  ;;  %1604 = vst.msk [vmem:[#allocation3 + $0x71] sm:$0x1] %vm1589_vm9, %v3354_v0 }
  0x4c   : > { %1605 = vst.msk [vmem:[#allocation3 + $0x89] sm:$0x1] %vm1589_vm9, %v3354_v0  ;;  %1606 = vst.msk [vmem:[#allocation3 + $0xa1] sm:$0x1] %vm1589_vm9, %v3354_v0 }
  0x4d   : > { %1607 = vst.msk [vmem:[#allocation3 + $0xb9] sm:$0x1] %vm1589_vm9, %v3354_v0  ;;  %1608 = vst.msk [vmem:[#allocation3 + $0xd1] sm:$0x1] %vm1589_vm9, %v3354_v0 }
  0x4e   : > { %795 = vrot.lane.b32.xlu1 %v751_v24, %s3357_s10  ;;  %793 = vrot.lane.b32.xlu0 %v749_v25, %s3357_s10  ;;  %v656_v24 = vrot.slane %v3733_v21, 1  ;;  %v731_v25 = vsel %vm726_vm2, %v728_v13, %v730_v17  ;;  %v3783_v13 = vld [vmem:[#allocation2 + $0x110] sm:$0xff]  ;;  %1609 = vst.msk [vmem:[#allocation3 + $0xe9] sm:$0x1] %vm1589_vm9, %v3354_v0 }
  0x4f   : > { %v1320_v23 = vrot.slane %v3783_v13, 1  ;;  %v1331_v31 = vrot.slane %v3783_v13, 2 }
  0x52   : > { %688 = vrot.lane.b32.xlu1 %v645_v32, %s3358_s22  ;;  %686 = vrot.lane.b32.xlu0 %v643_v33, %s3358_s22  ;;  %v767_v32 = vrot.slane %v3733_v21, 2  ;;  %v658_v33 = vsel %vm615_vm3, %v656_v24, %v657_v29 }
  0x54   : > { %v769_v45 = vsel %vm726_vm2, %v767_v32, %v768_v36 }
  0x56   : > { %799 = vrot.lane.b32.xlu1 %v756_v42, %s3357_s10  ;;  %797 = vrot.lane.b32.xlu0 %v754_v43, %s3357_s10  ;;  %v3751_v42 = vld [vmem:[#allocation2 + $0xe0] sm:$0xff]  ;;  %v578_v43 = vld [vmem:[#allocation2 + $0xe8] sm:$0xff] }
  0x57   : > { %v773_v50 = vrot.slane %v3751_v42, 2 }
  0x59   : > { %v774_v61 = vsel %vm726_vm2, %v772_v49, %v773_v50 }
  0x5a   : > { %692 = vrot.lane.b32.xlu1 %v650_v47, %s3358_s22  ;;  %690 = vrot.lane.b32.xlu0 %v648_v48, %s3358_s22  ;;  %v662_v47 = vrot.slane %v3751_v42, 1  ;;  %v664_v48 = vrot.slane %v578_v43, 1 }
  0x5c   : > { %v663_v54 = vsel %vm615_vm3, %v661_v44, %v662_v47  ;;  %v665_v56 = vsel %vm615_vm3, %v662_v47, %v664_v48 }
  0x5e   : > { %803 = vrot.lane.b32.xlu1 %v761_v57, %s3357_s10  ;;  %801 = vrot.lane.b32.xlu0 %v759_v58, %s3357_s10  ;;  %v775_v57 = vrot.slane %v578_v43, 2  ;;  %v3765_v58 = vld [vmem:[#allocation2 + $0xf0] sm:$0xff] }
  0x5f   : > { %v894_v6 = vrot.slane %v3765_v58, 2 }
  0x62   : > { %696 = vrot.lane.b32.xlu1 %v655_v62, %s3358_s22  ;;  %694 = vrot.lane.b32.xlu0 %v653_v63, %s3358_s22  ;;  %v776_v62 = vsel %vm726_vm2, %v773_v50, %v775_v57  ;;  %v883_v63 = vrot.slane %v3765_v58, 1 }
  0x64   : > { %v885_v8 = vsel %vm615_vm3, %v883_v63, %v884_v2 }
  0x66   : > { %807 = vrot.lane.b32.xlu1 %v766_v9, %s3357_s10  ;;  %805 = vrot.lane.b32.xlu0 %v764_v10, %s3357_s10  ;;  %v887_v9 = vsel %vm615_vm3, %v884_v2, %v886_v4  ;;  %v895_v10 = vrot.slane %v3767_v59, 2 }
  0x68   : > { %v896_v17 = vsel %vm726_vm2, %v894_v6, %v895_v10  ;;  %v898_v18 = vsel %vm726_vm2, %v895_v10, %v897_v11 }
  0x6a   : > { %668 = vrot.lane.b32.xlu1 %v620_v14, %s3358_s22  ;;  %666 = vrot.lane.b32.xlu0 %v618_v15, %s3358_s22  ;;  %v584_v14 = vld [vmem:[#allocation2 + $0x118] sm:$0xff]  ;;  %v1319_v15 = vrot.slane %v3781_v12, 1 }
  0x6b   : > { %v1322_v24 = vrot.slane %v584_v14, 1  ;;  %v1333_v32 = vrot.slane %v584_v14, 2 }
  0x6d   : > { %v1323_v29 = vsel %vm615_vm3, %v1320_v23, %v1322_v24 }
  0x6e   : > { %779 = vrot.lane.b32.xlu1 %v731_v25, %s3357_s10  ;;  %777 = vrot.lane.b32.xlu0 %v729_v26, %s3357_s10  ;;  %v1330_v25 = vrot.slane %v3781_v12, 2  ;;  %v1321_v26 = vsel %vm615_vm3, %v1319_v15, %v1320_v23 }
  0x72   : > { %698 = vrot.lane.b32.xlu0 %v658_v33, %s3358_s22  ;;  %700 = vrot.lane.b32.xlu1 %v660_v35, %s3358_s22  ;;  %v1332_v33 = vsel %vm726_vm2, %v1330_v25, %v1331_v31  ;;  %v1334_v35 = vsel %vm726_vm2, %v1331_v31, %v1333_v32 }
  0x76   : > { %809 = vrot.lane.b32.xlu0 %v769_v45, %s3357_s10  ;;  %811 = vrot.lane.b32.xlu1 %v771_v46, %s3357_s10  ;;  %v2757_v45 = vld [vmem:[%s4535_s3 + $0x20] sm:$0xff]  ;;  %v2758_v46 = vld [vmem:[%s4535_s3 + $0x28] sm:$0xf] }
  0x7a   : > { %702 = vrot.lane.b32.xlu0 %v663_v54, %s3358_s22  ;;  %704 = vrot.lane.b32.xlu1 %v665_v56, %s3358_s22 }
  0x7e   : > { %813 = vrot.lane.b32.xlu0 %v774_v61, %s3357_s10  ;;  %815 = vrot.lane.b32.xlu1 %v776_v62, %s3357_s10 }
  0x82   : > { %888 = vrot.lane.b32.xlu0 %v885_v8, %s3358_s22  ;;  %890 = vrot.lane.b32.xlu1 %v887_v9, %s3358_s22 }
  0x86   : > { %899 = vrot.lane.b32.xlu0 %v896_v17, %s3357_s10  ;;  %901 = vrot.lane.b32.xlu1 %v898_v18, %s3357_s10 }
  0x8a   : > { %1324 = vrot.lane.b32.xlu0 %v1321_v26, %s3358_s22  ;;  %1326 = vrot.lane.b32.xlu1 %v1323_v29, %s3358_s22 }
  0x8e   : > { %1335 = vrot.lane.b32.xlu0 %v1332_v33, %s3357_s10  ;;  %1337 = vrot.lane.b32.xlu1 %v1334_v35, %s3357_s10 }
  0xa4   : > { %v782_v36 = vpop.permute.xlu1 %781  ;;  %v671_v39 = vpop.permute.xlu0 %670 }
  0xa5   : > { %v839_v43 = vsel %vm486_vm1, %v3582_v27, %v671_v39  ;;  %v3818_v27 = vpack.c.bf16 %v2758_v46, %v2757_v45 }
  0xa6   : > { %v3806_v44 = vsel %vm857_vm7, %v839_v43, %v782_v36 }
  0xa7   : > { %2973 = vmatprep.mubr.msk.f32.mxu0 %vm912_vm8, %v3806_v44 }
  0xa8   : > { %v784_v47 = vpop.permute.xlu1 %783  ;;  %v673_v48 = vpop.permute.xlu0 %672 }
  0xa9   : > { %v840_v49 = vsel %vm486_vm1, %v3584_v28, %v673_v48 }
  0xaa   : > { %v3821_v50 = vsel %vm857_vm7, %v840_v49, %v784_v47 }
  0xab   : > { %2974 = vmatmul.mubr.msk.f32.vlgmr.msra.gmra.mrb[0].mxu0 %vm912_vm8, %v3821_v50 }
  0xac   : > { %v677_v54 = vpop.permute.xlu1 %676  ;;  %v675_v56 = vpop.permute.xlu0 %674  ;;  %3172 = vmatpush3.bf16.msk.msra.mxu0 %vm3650_vm6, %v3674_v30 }
  0xad   : > { %3175 = vmatprep.subr.msk.bf16.mxu0 %vm3650_vm6, %v3818_v27  ;;  %v842_v28 = vsel %vm486_vm1, %v3590_v34, %v677_v54  ;;  %v841_v57 = vsel %vm486_vm1, %v3592_v38, %v675_v56 }
  0xb0   : > { %v788_v60 = vpop.permute.xlu1 %787  ;;  %v786_v61 = vpop.permute.xlu0 %785 }
  0xb1   : > { %v3836_v62 = vsel %vm857_vm7, %v842_v28, %v788_v60  ;;  %v3839_v63 = vsel %vm857_vm7, %v841_v57, %v786_v61 }
  0xb2   : > { %2976 = vmatprep.mubr.msk.f32.mxu0 %vm912_vm8, %v3839_v63 }
  0xb3   : > { %2977 = vmatmul.mubr.msk.f32.gmra.mrb[2].mxu0 %vm912_vm8, %v3836_v62 }
  0xb4   : > { %v681_v30 = vpop.permute.xlu1 %680  ;;  %v679_v2 = vpop.permute.xlu0 %678 }
  0xb5   : > { %v844_v34 = vsel %vm486_vm1, %v3608_v51, %v681_v30  ;;  %v843_v38 = vsel %vm486_vm1, %v3610_v53, %v679_v2 }
  0xb8   : > { %v792_v4 = vpop.permute.xlu1 %791  ;;  %v790_v6 = vpop.permute.xlu0 %789 }
  0xb9   : > { %v3850_v8 = vsel %vm857_vm7, %v844_v34, %v792_v4  ;;  %v3853_v9 = vsel %vm857_vm7, %v843_v38, %v790_v6 }
  0xba   : > { %2979 = vmatprep.mubr.msk.f32.mxu0 %vm912_vm8, %v3853_v9 }
  0xbb   : > { %2980 = vmatmul.mubr.msk.f32.gmra.mrb[4].mxu0 %vm912_vm8, %v3850_v8 }
  0xbc   : > { %v685_v10 = vpop.permute.xlu1 %684  ;;  %v683_v11 = vpop.permute.xlu0 %682 }
  0xbd   : > { %v846_v51 = vsel %vm486_vm1, %v3624_v1, %v685_v10  ;;  %v845_v53 = vsel %vm486_vm1, %v3626_v3, %v683_v11 }
  0xc0   : > { %v796_v14 = vpop.permute.xlu1 %795  ;;  %v794_v15 = vpop.permute.xlu0 %793 }
  0xc1   : > { %v3864_v17 = vsel %vm857_vm7, %v846_v51, %v796_v14  ;;  %v3867_v18 = vsel %vm857_vm7, %v845_v53, %v794_v15 }
  0xc2   : > { %2982 = vmatprep.mubr.msk.f32.mxu0 %vm912_vm8, %v3867_v18 }
  0xc3   : > { %2983 = vmatmul.mubr.msk.f32.gmra.mrb[6].mxu0 %vm912_vm8, %v3864_v17 }
  0xc4   : > { %v689_v23 = vpop.permute.xlu1 %688  ;;  %v687_v24 = vpop.permute.xlu0 %686 }
  0xc5   : > { %v848_v1 = vsel %vm486_vm1, %v3646_v16, %v689_v23  ;;  %v847_v3 = vsel %vm486_vm1, %v3648_v19, %v687_v24 }
  0xc8   : > { %v800_v25 = vpop.permute.xlu1 %799  ;;  %v798_v26 = vpop.permute.xlu0 %797 }
  0xc9   : > { %v3878_v29 = vsel %vm857_vm7, %v848_v1, %v800_v25  ;;  %v3881_v31 = vsel %vm857_vm7, %v847_v3, %v798_v26 }
  0xca   : > { %2985 = vmatprep.mubr.msk.f32.mxu0 %vm912_vm8, %v3881_v31 }
  0xcb   : > { %2986 = vmatmul.mubr.msk.f32.gmra.mrb[8].mxu0 %vm912_vm8, %v3878_v29 }
  0xcc   : > { %v693_v32 = vpop.permute.xlu1 %692  ;;  %v691_v33 = vpop.permute.xlu0 %690 }
  0xcd   : > { %v850_v16 = vsel %vm486_vm1, %v3682_v37, %v693_v32  ;;  %v849_v19 = vsel %vm486_vm1, %v3687_v40, %v691_v33 }
  0xd0   : > { %v804_v35 = vpop.permute.xlu1 %803  ;;  %v802_v36 = vpop.permute.xlu0 %801 }
  0xd1   : > { %v3892_v39 = vsel %vm857_vm7, %v850_v16, %v804_v35  ;;  %v3895_v43 = vsel %vm857_vm7, %v849_v19, %v802_v36 }
  0xd2   : > { %2988 = vmatprep.mubr.msk.f32.mxu0 %vm912_vm8, %v3895_v43 }
  0xd3   : > { %2989 = vmatmul.mubr.msk.f32.gmra.mrb[10].mxu0 %vm912_vm8, %v3892_v39 }
  0xd4   : > { %v697_v45 = vpop.permute.xlu1 %696  ;;  %v695_v46 = vpop.permute.xlu0 %694 }
  0xd5   : > { %v852_v37 = vsel %vm486_vm1, %v3701_v52, %v697_v45  ;;  %v851_v40 = vsel %vm486_vm1, %v3703_v55, %v695_v46 }
  0xd8   : > { %v808_v47 = vpop.permute.xlu1 %807  ;;  %v806_v48 = vpop.permute.xlu0 %805 }
  0xd9   : > { %v3906_v49 = vsel %vm857_vm7, %v852_v37, %v808_v47  ;;  %v3909_v54 = vsel %vm857_vm7, %v851_v40, %v806_v48 }
  0xda   : > { %2991 = vmatprep.mubr.msk.f32.mxu0 %vm912_vm8, %v3909_v54 }
  0xdb   : > { %2992 = vmatmul.mubr.msk.f32.gmra.mrb[12].mxu0 %vm912_vm8, %v3906_v49 }
  0xdc   : > { %v669_v56 = vpop.permute.xlu1 %668  ;;  %v667_v28 = vpop.permute.xlu0 %666 }
  0xdd   : > { %v838_v52 = vsel %vm486_vm1, %v3717_v5, %v669_v56  ;;  %v837_v55 = vsel %vm486_vm1, %v3719_v7, %v667_v28 }
  0xe0   : > { %v780_v57 = vpop.permute.xlu1 %779  ;;  %v778_v60 = vpop.permute.xlu0 %777 }
  0xe1   : > { %v859_v61 = vsel %vm857_vm7, %v838_v52, %v780_v57  ;;  %v858_v30 = vsel %vm857_vm7, %v837_v55, %v778_v60 }
  0xe2   : > { %3007 = vmatprep.mubr.msk.f32.mxu0 %vm912_vm8, %v858_v30 }
  0xe3   : > { %3008 = vmatmul.mubr.msk.f32.vlgmr.msra.gmra.mrb[0].mxu0 %vm912_vm8, %v859_v61 }
  0xe4   : > { %3178 = vmatpush3.bf16.msk.msra.mxu0 %vm3650_vm6, %v3818_v27  ;;  %3010 = vmatprep.mubr.msk.f32.mxu0 %vm912_vm8, %v3806_v44  ;;  %v699_v5 = vpop.permute.xlu0 %698  ;;  %v701_v2 = vpop.permute.xlu1 %700 }
  0xe5   : > { %v853_v7 = vsel %vm486_vm1, %v3733_v21, %v699_v5  ;;  %v854_v34 = vsel %vm486_vm1, %v3735_v22, %v701_v2 }
  0xe7   : > { %3011 = vmatmul.mubr.msk.f32.gmra.mrb[2].mxu0 %vm912_vm8, %v3821_v50 }
  0xe8   : > { %3013 = vmatprep.mubr.msk.f32.mxu0 %vm912_vm8, %v3839_v63  ;;  %v810_v38 = vpop.permute.xlu0 %809  ;;  %v812_v20 = vpop.permute.xlu1 %811 }
  0xe9   : > { %v875_v27 = vsel %vm857_vm7, %v854_v34, %v812_v20  ;;  %v874_v44 = vsel %vm857_vm7, %v853_v7, %v810_v38 }
  0xea   : > { %2994 = vmatprep.mubr.msk.f32.mxu1 %vm912_vm8, %v874_v44 }
  0xeb   : > { %3014 = vmatmul.mubr.msk.f32.gmra.mrb[4].mxu0 %vm912_vm8, %v3836_v62  ;;  %2995 = vmatmul.mubr.msk.f32.vlgmr.msra.gmra.mrb[0].mxu1 %vm912_vm8, %v875_v27 }
  0xec   : > { %3016 = vmatprep.mubr.msk.f32.mxu0 %vm912_vm8, %v3853_v9  ;;  %v703_v21 = vpop.permute.xlu0 %702  ;;  %v705_v22 = vpop.permute.xlu1 %704 }
  0xed   : > { %v855_v50 = vsel %vm486_vm1, %v3749_v41, %v703_v21  ;;  %v856_v4 = vsel %vm486_vm1, %v3751_v42, %v705_v22 }
  0xef   : > { %3017 = vmatmul.mubr.msk.f32.gmra.mrb[6].mxu0 %vm912_vm8, %v3850_v8 }
  0xf0   : > { %3019 = vmatprep.mubr.msk.f32.mxu0 %vm912_vm8, %v3867_v18  ;;  %v814_v6 = vpop.permute.xlu0 %813  ;;  %v816_v10 = vpop.permute.xlu1 %815 }
  0xf1   : > { %v876_v11 = vsel %vm857_vm7, %v855_v50, %v814_v6  ;;  %v877_v51 = vsel %vm857_vm7, %v856_v4, %v816_v10 }
  0xf2   : > { %2997 = vmatprep.mubr.msk.f32.mxu1 %vm912_vm8, %v876_v11 }
  0xf3   : > { %3020 = vmatmul.mubr.msk.f32.gmra.mrb[8].mxu0 %vm912_vm8, %v3864_v17  ;;  %2998 = vmatmul.mubr.msk.f32.gmra.mrb[2].mxu1 %vm912_vm8, %v877_v51 }
  0xf4   : > { %3022 = vmatprep.mubr.msk.f32.mxu0 %vm912_vm8, %v3881_v31  ;;  %v889_v41 = vpop.permute.xlu0 %888  ;;  %v891_v42 = vpop.permute.xlu1 %890 }
  0xf5   : > { %v905_v53 = vsel %vm486_vm1, %v3765_v58, %v889_v41  ;;  %v906_v14 = vsel %vm486_vm1, %v3767_v59, %v891_v42 }
  0xf7   : > { %3023 = vmatmul.mubr.msk.f32.gmra.mrb[10].mxu0 %vm912_vm8, %v3878_v29 }
  0xf8   : > { %3025 = vmatprep.mubr.msk.f32.mxu0 %vm912_vm8, %v3895_v43  ;;  %v900_v15 = vpop.permute.xlu0 %899  ;;  %v902_v23 = vpop.permute.xlu1 %901 }
  0xf9   : > { %v907_v24 = vsel %vm857_vm7, %v905_v53, %v900_v15  ;;  %v908_v1 = vsel %vm857_vm7, %v906_v14, %v902_v23 }
  0xfa   : > { %3000 = vmatprep.mubr.msk.f32.mxu1 %vm912_vm8, %v907_v24 }
  0xfb   : > { %3026 = vmatmul.mubr.msk.f32.gmra.mrb[12].mxu0 %vm912_vm8, %v3892_v39  ;;  %3001 = vmatmul.mubr.msk.f32.gmra.mrb[4].mxu1 %vm912_vm8, %v908_v1 }
  0xfc   : > { %3028 = vmatprep.mubr.msk.f32.mxu0 %vm912_vm8, %v3909_v54  ;;  %v1325_v58 = vpop.permute.xlu0 %1324  ;;  %v1327_v59 = vpop.permute.xlu1 %1326 }
  0xff   : > { %3029 = vmatmul.mubr.msk.f32.gmra.mrb[14].mxu0 %vm912_vm8, %v3906_v49 }
 0x100   : > { %3031 = vmatprep.mubr.msk.f32.mxu0 %vm912_vm8, %v874_v44 }
 0x103   : > { %3032 = vmatmul.mubr.msk.f32.gmra.mrb[16].mxu0 %vm912_vm8, %v875_v27 }
 0x104   : > { %3034 = vmatprep.mubr.msk.f32.mxu0 %vm912_vm8, %v876_v11 }
 0x107   : > { %3035 = vmatmul.mubr.msk.f32.gmra.mrb[18].mxu0 %vm912_vm8, %v877_v51 }
 0x108   : > { %3041 = vmatprep.mubr.msk.f32.mxu0 %vm912_vm8, %v3839_v63  ;;  %v1336_v63 = vpop.permute.xlu0 %1335 }
 0x10b   : > { %3042 = vmatmul.mubr.msk.f32.vlgmr.msra.gmra.mrb[0].mxu0 %vm912_vm8, %v3836_v62  ;;  %v1341_v62 = vsel %vm486_vm1, %v3781_v12, %v1325_v58 }
 0x10c   : > { %3044 = vmatprep.mubr.msk.f32.mxu0 %vm912_vm8, %v3853_v9  ;;  %v1342_v9 = vsel %vm486_vm1, %v3783_v13, %v1327_v59 }
 0x10f   : > { %3045 = vmatmul.mubr.msk.f32.gmra.mrb[2].mxu0 %vm912_vm8, %v3850_v8  ;;  %v1343_v8 = vsel %vm857_vm7, %v1341_v62, %v1336_v63 }
 0x110   : > { %3047 = vmatprep.mubr.msk.f32.mxu0 %vm912_vm8, %v3867_v18 }
 0x113   : > { %3048 = vmatmul.mubr.msk.f32.gmra.mrb[4].mxu0 %vm912_vm8, %v3864_v17  ;;  %v1338_v17 = vpop.permute.xlu1 %1337 }
 0x114   : > { %3050 = vmatprep.mubr.msk.f32.mxu0 %vm912_vm8, %v3881_v31  ;;  %v1344_v18 = vsel %vm857_vm7, %v1342_v9, %v1338_v17  ;;  %v4075_v31 = vld [vmem:[%s4536_s4] ss:$0 sm:$0xff] }
 0x117   : > { %3051 = vmatmul.mubr.msk.f32.gmra.mrb[6].mxu0 %vm912_vm8, %v3878_v29 }
 0x118   : > { %3053 = vmatprep.mubr.msk.f32.mxu0 %vm912_vm8, %v3895_v43 }
 0x11b   : > { %3054 = vmatmul.mubr.msk.f32.gmra.mrb[8].mxu0 %vm912_vm8, %v3892_v39 }
 0x11c   : > { %3056 = vmatprep.mubr.msk.f32.mxu0 %vm912_vm8, %v3909_v54 }
 0x11f   : > { %3057 = vmatmul.mubr.msk.f32.gmra.mrb[10].mxu0 %vm912_vm8, %v3906_v49 }
 0x120   : > { %3059 = vmatprep.mubr.msk.f32.mxu0 %vm912_vm8, %v874_v44 }
 0x123   : > { %3060 = vmatmul.mubr.msk.f32.gmra.mrb[12].mxu0 %vm912_vm8, %v875_v27 }
 0x124   : > { %3062 = vmatprep.mubr.msk.f32.mxu0 %vm912_vm8, %v876_v11 }
 0x127   : > { %3063 = vmatmul.mubr.msk.f32.gmra.mrb[14].mxu0 %vm912_vm8, %v877_v51 }
 0x128   : > { %3065 = vmatprep.mubr.msk.f32.mxu0 %vm912_vm8, %v907_v24 }
 0x12b   : > { %3066 = vmatmul.mubr.msk.f32.gmra.mrb[16].mxu0 %vm912_vm8, %v908_v1 }
 0x12c   : > { %3068 = vmatprep.mubr.msk.f32.mxu0 %vm912_vm8, %v1343_v8 }
 0x12f   : > { %3069 = vmatmul.mubr.msk.f32.gmra.mrb[18].mxu0 %vm912_vm8, %v1344_v18 }
 0x1be   : > { %v4060_v12 = vpop.f32.mrb[0].mxu1 }
 0x1bf   : > { %v4062_v13 = vpop.f32.mrb[1].mxu1 }
 0x1c6   : > { %v4064_v3 = vpop.f32.mrb[2].mxu1 }
 0x1c7   : > { %v4066_v25 = vpop.f32.mrb[3].mxu1 }
 0x1ce   : > { %v4068_v26 = vpop.f32.mrb[4].mxu1 }
 0x1cf   : > { %v4070_v29 = vpop.f32.mrb[5].mxu1 }
 0x1de   : > { %v3043_v32 = vpop.f32.mrb[0].mxu0 }
 0x1df   : > { %v1550_v0 = vadd.f32 %v3043_v32, %v4075_v31  ;;  %v1423_v33 = vpop.f32.mrb[1].mxu0 }
 0x1e0   : > { %v1549_v16 = vadd.f32 %v4075_v31, %v1423_v33 }
 0x1e1   : > { %v1570_v19 = vmax.f32 %v1550_v0, 0.0 }
 0x1e2   : > { %v1569_v35 = vmax.f32 %v1549_v16, 0.0  ;;  %v3046_v36 = vpop.f32.mrb[2].mxu0 }
 0x1e3   : > { %1611 = vst.msk [vmem:[#allocation3 + $0x9] sm:$0xff] %vm857_vm7, %v1570_v19  ;;  %v1552_v39 = vadd.f32 %v3046_v36, %v4075_v31  ;;  %v1433_v43 = vpop.f32.mrb[3].mxu0 }
 0x1e4   : > { %1610 = vst.msk [vmem:[#allocation3 + $0x1] sm:$0xff] %vm857_vm7, %v1569_v35  ;;  %v1551_v45 = vadd.f32 %v4075_v31, %v1433_v43 }
 0x1e5   : > { %v1572_v46 = vmax.f32 %v1552_v39, 0.0 }
 0x1e6   : > { %v1571_v37 = vmax.f32 %v1551_v45, 0.0  ;;  %v3049_v40 = vpop.f32.mrb[4].mxu0 }
 0x1e7   : > { %1613 = vst.msk [vmem:[#allocation3 + $0x21] sm:$0xff] %vm857_vm7, %v1572_v46  ;;  %v1554_v47 = vadd.f32 %v3049_v40, %v4075_v31  ;;  %v1443_v48 = vpop.f32.mrb[5].mxu0 }
 0x1e8   : > { %1612 = vst.msk [vmem:[#allocation3 + $0x19] sm:$0xff] %vm857_vm7, %v1571_v37  ;;  %v1553_v49 = vadd.f32 %v4075_v31, %v1443_v48 }
 0x1e9   : > { %v1574_v54 = vmax.f32 %v1554_v47, 0.0 }
 0x1ea   : > { %v1573_v56 = vmax.f32 %v1553_v49, 0.0  ;;  %v3052_v28 = vpop.f32.mrb[6].mxu0 }
 0x1eb   : > { %1615 = vst.msk [vmem:[#allocation3 + $0x39] sm:$0xff] %vm857_vm7, %v1574_v54  ;;  %v1556_v52 = vadd.f32 %v3052_v28, %v4075_v31  ;;  %v1453_v55 = vpop.f32.mrb[7].mxu0 }
 0x1ec   : > { %1614 = vst.msk [vmem:[#allocation3 + $0x31] sm:$0xff] %vm857_vm7, %v1573_v56  ;;  %v1555_v57 = vadd.f32 %v4075_v31, %v1453_v55 }
 0x1ed   : > { %v1576_v60 = vmax.f32 %v1556_v52, 0.0 }
 0x1ee   : > { %v1575_v61 = vmax.f32 %v1555_v57, 0.0  ;;  %v3055_v30 = vpop.f32.mrb[8].mxu0 }
 0x1ef   : > { %1617 = vst.msk [vmem:[#allocation3 + $0x51] sm:$0xff] %vm857_vm7, %v1576_v60  ;;  %v1558_v5 = vadd.f32 %v3055_v30, %v4075_v31  ;;  %v1463_v2 = vpop.f32.mrb[9].mxu0 }
 0x1f0   : > { %1616 = vst.msk [vmem:[#allocation3 + $0x49] sm:$0xff] %vm857_vm7, %v1575_v61  ;;  %v1557_v7 = vadd.f32 %v4075_v31, %v1463_v2 }
 0x1f1   : > { %v1578_v34 = vmax.f32 %v1558_v5, 0.0 }
 0x1f2   : > { %v1577_v38 = vmax.f32 %v1557_v7, 0.0  ;;  %v3058_v20 = vpop.f32.mrb[10].mxu0 }
 0x1f3   : > { %1619 = vst.msk [vmem:[#allocation3 + $0x69] sm:$0xff] %vm857_vm7, %v1578_v34  ;;  %v1560_v27 = vadd.f32 %v3058_v20, %v4075_v31  ;;  %v1473_v44 = vpop.f32.mrb[11].mxu0 }
 0x1f4   : > { %1618 = vst.msk [vmem:[#allocation3 + $0x61] sm:$0xff] %vm857_vm7, %v1577_v38  ;;  %v1559_v21 = vadd.f32 %v4075_v31, %v1473_v44 }
 0x1f5   : > { %v1580_v22 = vmax.f32 %v1560_v27, 0.0 }
 0x1f6   : > { %v1579_v50 = vmax.f32 %v1559_v21, 0.0  ;;  %v3061_v4 = vpop.f32.mrb[12].mxu0 }
 0x1f7   : > { %1621 = vst.msk [vmem:[#allocation3 + $0x81] sm:$0xff] %vm857_vm7, %v1580_v22  ;;  %v1562_v6 = vadd.f32 %v3061_v4, %v4075_v31  ;;  %v1483_v10 = vpop.f32.mrb[13].mxu0 }
 0x1f8   : > { %1620 = vst.msk [vmem:[#allocation3 + $0x79] sm:$0xff] %vm857_vm7, %v1579_v50  ;;  %v1561_v11 = vadd.f32 %v4075_v31, %v1483_v10 }
 0x1f9   : > { %v1582_v51 = vmax.f32 %v1562_v6, 0.0 }
 0x1fa   : > { %v1581_v41 = vmax.f32 %v1561_v11, 0.0  ;;  %v3064_v42 = vpop.f32.mrb[14].mxu0 }
 0x1fb   : > { %1623 = vst.msk [vmem:[#allocation3 + $0x99] sm:$0xff] %vm857_vm7, %v1582_v51  ;;  %v3193_v53 = vadd.f32 %v3064_v42, %v4060_v12  ;;  %v1493_v14 = vpop.f32.mrb[15].mxu0 }
 0x1fc   : > { %1622 = vst.msk [vmem:[#allocation3 + $0x91] sm:$0xff] %vm857_vm7, %v1581_v41  ;;  %v3194_v15 = vadd.f32 %v1493_v14, %v4062_v13 }
 0x1fd   : > { %v1564_v23 = vadd.f32 %v3193_v53, %v4075_v31 }
 0x1fe   : > { %v1563_v24 = vadd.f32 %v3194_v15, %v4075_v31  ;;  %v3067_v1 = vpop.f32.mrb[16].mxu0 }
 0x1ff   : > { %v1584_v58 = vmax.f32 %v1564_v23, 0.0  ;;  %v3195_v59 = vadd.f32 %v3067_v1, %v4064_v3  ;;  %v1503_v62 = vpop.f32.mrb[17].mxu0 }
 0x200   : > { %v1583_v63 = vmax.f32 %v1563_v24, 0.0  ;;  %v3196_v8 = vadd.f32 %v1503_v62, %v4066_v25 }
 0x201   : > { %1625 = vst.msk [vmem:[#allocation3 + $0xb1] sm:$0xff] %vm857_vm7, %v1584_v58  ;;  %v1566_v9 = vadd.f32 %v3195_v59, %v4075_v31 }
 0x202   : > { %1624 = vst.msk [vmem:[#allocation3 + $0xa9] sm:$0xff] %vm857_vm7, %v1583_v63  ;;  %v1565_v17 = vadd.f32 %v3196_v8, %v4075_v31  ;;  %v3070_v18 = vpop.f32.mrb[18].mxu0 }
 0x203   : > { %v1586_v12 = vmax.f32 %v1566_v9, 0.0  ;;  %v3197_v13 = vadd.f32 %v3070_v18, %v4068_v26  ;;  %v1513_v32 = vpop.f32.mrb[19].mxu0  ;;  %v3360_v26 = vmov (!%p2711_p11), 0.0  }
 0x204   : > { %v1585_v0 = vmax.f32 %v1565_v17, 0.0  ;;  %v3198_v3 = vadd.f32 %v1513_v32, %v4070_v29  ;;  %1632 = sbr.rel (%p2711_p11) target bundleno = 523 (0x20b), region = 60  ;;  %1633 = vst.msk [vmem:[#allocation3 + $0x1] sm:$0xff] (!%p2711_p11), %vm857_vm7, %v3360_v26  ;;  %1634 = vst.msk [vmem:[#allocation3 + $0x9] sm:$0xff] (!%p2711_p11), %vm857_vm7, %v3360_v26 }
 0x205   : > { %1627 = vst.msk [vmem:[#allocation3 + $0xc9] sm:$0xff] %vm857_vm7, %v1586_v12  ;;  %v1568_v25 = vadd.f32 %v3197_v13, %v4075_v31 }
 0x206   : > { %1626 = vst.msk [vmem:[#allocation3 + $0xc1] sm:$0xff] %vm857_vm7, %v1585_v0  ;;  %v1567_v33 = vadd.f32 %v3198_v3, %v4075_v31 }
 0x207   : > { %v1588_v16 = vmax.f32 %v1568_v25, 0.0 }
 0x208   : > { %v1587_v19 = vmax.f32 %v1567_v33, 0.0 }
 0x209   : > { %1629 = vst.msk [vmem:[#allocation3 + $0xe1] sm:$0xff] %vm857_vm7, %v1588_v16 }
 0x20a   : > { %1628 = vst.msk [vmem:[#allocation3 + $0xd9] sm:$0xff] %vm857_vm7, %v1587_v19 }
 0x20b PF: > { %1637 = sbr.rel (%p2712_p12) target bundleno = 530 (0x212), region = 64  ;;  %v3361_v29 = vmov (!%p2712_p12), 0.0  }
 0x20c   : > { %1639 = vst.msk [vmem:[#allocation3 + $0xd9] sm:$0xff] (!%p2712_p12), %vm857_vm7, %v3361_v29  ;;  %1640 = vst.msk [vmem:[#allocation3 + $0xe1] sm:$0xff] (!%p2712_p12), %vm857_vm7, %v3361_v29 }
 0x212 PF: > { %v4131_v31 = vld [vmem:[#allocation3 + $0x18] sm:$0xff]  ;;  %v4133_v35 = vld [vmem:[#allocation3 + $0x20] sm:$0xff]  ;;  %v1646_v36 = vld [vmem:[#allocation3 + $0x28] sm:$0xff]  ;;  %s3362_s24 = smov 16   ;;  %vm1887_vm10 = vcmask 130048   ;;  %vm1940_vm11 = vcmask 195584  }
 0x213   : > { %v1788_v39 = vrot.slane %v4131_v31, 2  ;;  %v1789_v43 = vrot.slane %v4133_v35, 2  ;;  %v1700_v45 = vrot.slane %v4131_v31, 1  ;;  %v1701_v46 = vrot.slane %v4133_v35, 1  ;;  %v4139_v37 = vld [vmem:[#allocation3 + $0x38] sm:$0xff]  ;;  %v1649_v48 = vld [vmem:[#allocation3 + $0x40] sm:$0xff] }
 0x214   : > { %v1791_v40 = vrot.slane %v1646_v36, 2  ;;  %v1703_v47 = vrot.slane %v1646_v36, 1  ;;  %v4141_v49 = vld [vmem:[#allocation3 + $0x30] sm:$0xff]  ;;  %v1706_v28 = vrot.slane %v4139_v37, 1  ;;  %v1708_v57 = vrot.slane %v1649_v48, 1  ;;  %v1652_v38 = vld [vmem:[#allocation3 + $0x58] sm:$0xff] }
 0x215   : > { %v1790_v54 = vsel %vm726_vm2, %v1788_v39, %v1789_v43  ;;  %v1702_v56 = vsel %vm615_vm3, %v1700_v45, %v1701_v46  ;;  %v1705_v60 = vrot.slane %v4141_v49, 1  ;;  %v1794_v61 = vrot.slane %v4139_v37, 2  ;;  %v4157_v34 = vld [vmem:[#allocation3 + $0x50] sm:$0xff]  ;;  %v4159_v20 = vld [vmem:[#allocation3 + $0x48] sm:$0xff]  ;;  %v4175_v53 = vld [vmem:[#allocation3 + $0x60] sm:$0xff] }
 0x216   : > { %1827 = vrot.lane.b32.xlu1 %v1790_v54, %s3362_s24  ;;  %1739 = vrot.lane.b32.xlu0 %v1702_v56, %s3357_s10  ;;  %v1792_v52 = vsel %vm726_vm2, %v1789_v43, %v1791_v40  ;;  %v1704_v55 = vsel %vm615_vm3, %v1701_v46, %v1703_v47  ;;  %v1709_v30 = vsel %vm615_vm3, %v1706_v28, %v1708_v57  ;;  %v1796_v2 = vrot.slane %v1649_v48, 2  ;;  %v4173_v41 = vld [vmem:[#allocation3 + $0x68] sm:$0xff]  ;;  %v1655_v42 = vld [vmem:[#allocation3 + $0x70] sm:$0xff]  ;;  %v2783_v14 = vld [vmem:[%s4537_s5 + $0x18] sm:$0xff] }
 0x217   : > { %v1707_v5 = vsel %vm615_vm3, %v1705_v60, %v1706_v28  ;;  %v1793_v7 = vrot.slane %v4141_v49, 2  ;;  %v1711_v27 = vrot.slane %v4157_v34, 1  ;;  %v1713_v22 = vrot.slane %v1652_v38, 1  ;;  %v2784_v15 = vld [vmem:[%s4537_s5 + $0x20] sm:$0xff]  ;;  %v2785_v8 = vld [vmem:[%s4537_s5 + $0x28] sm:$0xff]  ;;  %v4200_v0 = vld [vmem:[#allocation3 + $0x78] sm:$0xff] }
 0x218   : > { %v1797_v44 = vsel %vm726_vm2, %v1794_v61, %v1796_v2  ;;  %v1710_v50 = vrot.slane %v4159_v20, 1  ;;  %v1799_v4 = vrot.slane %v4157_v34, 2  ;;  %v1801_v11 = vrot.slane %v1652_v38, 2  ;;  %v4198_v13 = vld [vmem:[#allocation3 + $0x80] sm:$0xff]  ;;  %v1658_v32 = vld [vmem:[#allocation3 + $0x88] sm:$0xff]  ;;  %v4223_v47 = vld [vmem:[#allocation3 + $0x98] sm:$0xff] }
 0x219   : > { %v1795_v21 = vsel %vm726_vm2, %v1793_v7, %v1794_v61  ;;  %v1714_v6 = vsel %vm615_vm3, %v1711_v27, %v1713_v22  ;;  %v1798_v51 = vrot.slane %v4159_v20, 2  ;;  %v1716_v23 = vrot.slane %v4173_v41, 1  ;;  %v1904_v33 = vld [vmem:[%s4537_s5] sm:$0xff]  ;;  %v1905_v16 = vld [vmem:[%s4537_s5 + $0x8] sm:$0xff]  ;;  %v4225_v54 = vld [vmem:[#allocation3 + $0x90] sm:$0xff] }
 0x21a   : > { %1829 = vrot.lane.b32.xlu1 %v1792_v52, %s3362_s24  ;;  %1741 = vrot.lane.b32.xlu0 %v1704_v55, %s3357_s10  ;;  %v1712_v10 = vsel %vm615_vm3, %v1710_v50, %v1711_v27  ;;  %v1802_v24 = vsel %vm726_vm2, %v1799_v4, %v1801_v11  ;;  %v1718_v58 = vrot.slane %v1655_v42, 1  ;;  %v1715_v59 = vrot.slane %v4175_v53, 1  ;;  %v1661_v48 = vld [vmem:[#allocation3 + $0xa0] sm:$0xff]  ;;  %v4239_v7 = vld [vmem:[#allocation3 + $0xb0] sm:$0xff]  ;;  %v1664_v38 = vld [vmem:[#allocation3 + $0xb8] sm:$0xff] }
 0x21b   : > { %v1800_v1 = vsel %vm726_vm2, %v1798_v51, %v1799_v4  ;;  %v3179_v62 = vpack.c.bf16 %v2784_v15, %v2783_v14  ;;  %v1804_v63 = vrot.slane %v4173_v41, 2  ;;  %v1806_v18 = vrot.slane %v1655_v42, 2  ;;  %v4241_v27 = vld [vmem:[#allocation3 + $0xa8] sm:$0xff]  ;;  %v1667_v15 = vld [vmem:[#allocation3 + $0xd0] sm:$0xff] }
 0x21c   : > { %v1719_v9 = vsel %vm615_vm3, %v1716_v23, %v1718_v58  ;;  %v1717_v17 = vsel %vm615_vm3, %v1715_v59, %v1716_v23  ;;  %v1803_v12 = vrot.slane %v4175_v53, 2  ;;  %v1721_v3 = vrot.slane %v4198_v13, 1  ;;  %v4255_v14 = vld [vmem:[#allocation3 + $0xc8] sm:$0xff]  ;;  %v4257_v23 = vld [vmem:[#allocation3 + $0xc0] sm:$0xff] }
 0x21d   : > { %3180 = vmatprep.subr.bf16.mxu1 %v3179_v62  ;;  %v1723_v25 = vrot.slane %v1658_v32, 1  ;;  %v1807_v19 = vsel %vm726_vm2, %v1804_v63, %v1806_v18  ;;  %v1720_v29 = vrot.slane %v4200_v0, 1  ;;  %v4214_v36 = vpack.c.bf16 %v1905_v16, %v1904_v33 }
 0x21e   : > { %1745 = vrot.lane.b32.xlu1 %v1709_v30, %s3357_s10  ;;  %1743 = vrot.lane.b32.xlu0 %v1707_v5, %s3357_s10  ;;  %v1805_v26 = vsel %vm726_vm2, %v1803_v12, %v1804_v63  ;;  %v1809_v39 = vrot.slane %v4198_v13, 2  ;;  %v1811_v46 = vrot.slane %v1658_v32, 2  ;;  %v1808_v40 = vrot.slane %v4200_v0, 2  ;;  %v4271_v12 = vld [vmem:[#allocation3 + $0x8] sm:$0xff]  ;;  %v1643_v32 = vld [vmem:[#allocation3 + $0x10] sm:$0xff] }
 0x21f   : > { %3182 = vmatpush3.bf16.msra.mxu1 %v3179_v62  ;;  %v1724_v43 = vsel %vm615_vm3, %v1721_v3, %v1723_v25  ;;  %v1722_v45 = vsel %vm615_vm3, %v1720_v29, %v1721_v3  ;;  %v1726_v56 = vrot.slane %v4223_v47, 1  ;;  %v1728_v55 = vrot.slane %v1661_v48, 1  ;;  %v4273_v3 = vld [vmem:[#allocation3] sm:$0xff] }
 0x220   : > { %3075 = vmatprep.subr.mxu1 %v2785_v8  ;;  %v1812_v28 = vsel %vm726_vm2, %v1809_v39, %v1811_v46  ;;  %v1810_v52 = vsel %vm726_vm2, %v1808_v40, %v1809_v39  ;;  %v1725_v57 = vrot.slane %v4225_v54, 1  ;;  %v1814_v60 = vrot.slane %v4223_v47, 2  ;;  %v4287_v40 = vld [vmem:[#allocation3 + $0xd8] sm:$0xff] }
 0x221   : > { %v1729_v61 = vsel %vm615_vm3, %v1726_v56, %v1728_v55  ;;  %v1816_v5 = vrot.slane %v1661_v48, 2  ;;  %v1813_v2 = vrot.slane %v4225_v54, 2  ;;  %v1733_v50 = vrot.slane %v1664_v38, 1  ;;  %v4289_v48 = vld [vmem:[#allocation3 + $0xe0] sm:$0xff] }
 0x222   : > { %1833 = vrot.lane.b32.xlu1 %v1797_v44, %s3362_s24  ;;  %1831 = vrot.lane.b32.xlu0 %v1795_v21, %s3362_s24  ;;  %v1727_v30 = vsel %vm615_vm3, %v1725_v57, %v1726_v56  ;;  %v1731_v44 = vrot.slane %v4239_v7, 1  ;;  %v1730_v4 = vrot.slane %v4241_v27, 1  ;;  %v1821_v51 = vrot.slane %v1664_v38, 2  ;;  %v1670_v56 = vld [vmem:[#allocation3 + $0xe8] sm:$0xff] }
 0x223   : > { %3076 = vmatpush3.msra.mxu1 %v2785_v8  ;;  %v1817_v21 = vsel %vm726_vm2, %v1814_v60, %v1816_v5  ;;  %v1815_v22 = vsel %vm726_vm2, %v1813_v2, %v1814_v60  ;;  %v1818_v42 = vrot.slane %v4241_v27, 2  ;;  %v1913_v59 = vrot.slane %v1667_v15, 1 }
 0x224   : > { %3184 = vmatprep.subr.bf16.mxu1 %v4214_v36  ;;  %v1732_v11 = vsel %vm615_vm3, %v1730_v4, %v1731_v44  ;;  %v1910_v62 = vrot.slane %v4257_v23, 1  ;;  %v1922_v63 = vrot.slane %v4255_v14, 2  ;;  %v1921_v18 = vrot.slane %v4257_v23, 2 }
 0x225   : > { %v1696_v25 = vrot.slane %v4271_v12, 1  ;;  %v1784_v29 = vrot.slane %v4271_v12, 2  ;;  %v1783_v46 = vrot.slane %v4273_v3, 2  ;;  %v2289_v57 = vrot.slane %v4289_v48, 1 }
 0x226   : > { %1749 = vrot.lane.b32.xlu1 %v1714_v6, %s3357_s10  ;;  %1747 = vrot.lane.b32.xlu0 %v1712_v10, %s3357_s10  ;;  %v1819_v6 = vrot.slane %v4239_v7, 2  ;;  %v1734_v10 = vsel %vm615_vm3, %v1731_v44, %v1733_v50  ;;  %v1923_v16 = vsel %vm726_vm2, %v1921_v18, %v1922_v63  ;;  %v2291_v60 = vrot.slane %v1670_v56, 1 }
 0x227   : > { %v1785_v55 = vsel %vm726_vm2, %v1783_v46, %v1784_v29  ;;  %v2300_v2 = vrot.slane %v4289_v48, 2  ;;  %v2302_v38 = vrot.slane %v1670_v56, 2 }
 0x228   : > { %v1820_v58 = vsel %vm726_vm2, %v1818_v42, %v1819_v6  ;;  %v2292_v5 = vsel %vm615_vm3, %v2289_v57, %v2291_v60 }
 0x22a   : > { %1837 = vrot.lane.b32.xlu1 %v1802_v24, %s3362_s24  ;;  %1835 = vrot.lane.b32.xlu0 %v1800_v1, %s3362_s24  ;;  %v1911_v24 = vrot.slane %v4255_v14, 1  ;;  %v1822_v1 = vsel %vm726_vm2, %v1819_v6, %v1821_v51 }
 0x22c   : > { %v1914_v8 = vsel %vm615_vm3, %v1911_v24, %v1913_v59 }
 0x22e   : > { %1753 = vrot.lane.b32.xlu1 %v1719_v9, %s3357_s10  ;;  %1751 = vrot.lane.b32.xlu0 %v1717_v17, %s3357_s10  ;;  %v1912_v9 = vsel %vm615_vm3, %v1910_v62, %v1911_v24  ;;  %v1924_v17 = vrot.slane %v1667_v15, 2  ;;  %v1906_v15 = vld [vmem:[%s4537_s5 + $0x10] sm:$0xff]  ;;  %v2819_v24 = vld [vmem:[%s4537_s5 + $0x38] sm:$0xff] }
 0x230   : > { %v1925_v33 = vsel %vm726_vm2, %v1922_v63, %v1924_v17 }
 0x232   : > { %1841 = vrot.lane.b32.xlu1 %v1807_v19, %s3362_s24  ;;  %1839 = vrot.lane.b32.xlu0 %v1805_v26, %s3362_s24  ;;  %v1698_v19 = vrot.slane %v1643_v32, 1  ;;  %v1695_v26 = vrot.slane %v4273_v3, 1 }
 0x234   : > { %v1699_v39 = vsel %vm615_vm3, %v1696_v25, %v1698_v19 }
 0x236   : > { %1757 = vrot.lane.b32.xlu1 %v1724_v43, %s3357_s10  ;;  %1755 = vrot.lane.b32.xlu0 %v1722_v45, %s3357_s10  ;;  %v1697_v43 = vsel %vm615_vm3, %v1695_v26, %v1696_v25  ;;  %v1786_v45 = vrot.slane %v1643_v32, 2 }
 0x23a   : > { %1845 = vrot.lane.b32.xlu1 %v1812_v28, %s3362_s24  ;;  %1843 = vrot.lane.b32.xlu0 %v1810_v52, %s3362_s24  ;;  %v2288_v28 = vrot.slane %v4287_v40, 1  ;;  %v1787_v52 = vsel %vm726_vm2, %v1784_v29, %v1786_v45 }
 0x23e   : > { %1761 = vrot.lane.b32.xlu1 %v1729_v61, %s3357_s10  ;;  %1759 = vrot.lane.b32.xlu0 %v1727_v30, %s3357_s10  ;;  %v2299_v61 = vrot.slane %v4287_v40, 2  ;;  %v2290_v30 = vsel %vm615_vm3, %v2288_v28, %v2289_v57 }
 0x240   : > { %v2301_v44 = vsel %vm726_vm2, %v2299_v61, %v2300_v2 }
 0x242   : > { %1849 = vrot.lane.b32.xlu1 %v1817_v21, %s3362_s24  ;;  %1847 = vrot.lane.b32.xlu0 %v1815_v22, %s3362_s24  ;;  %v2303_v21 = vsel %vm726_vm2, %v2300_v2, %v2302_v38 }
 0x246   : > { %1765 = vrot.lane.b32.xlu1 %v1734_v10, %s3357_s10  ;;  %1763 = vrot.lane.b32.xlu0 %v1732_v11, %s3357_s10 }
 0x24a   : > { %1853 = vrot.lane.b32.xlu1 %v1822_v1, %s3362_s24  ;;  %1851 = vrot.lane.b32.xlu0 %v1820_v58, %s3362_s24 }
 0x24e   : > { %1917 = vrot.lane.b32.xlu1 %v1914_v8, %s3357_s10  ;;  %1915 = vrot.lane.b32.xlu0 %v1912_v9, %s3357_s10 }
 0x252   : > { %1928 = vrot.lane.b32.xlu1 %v1925_v33, %s3362_s24  ;;  %1926 = vrot.lane.b32.xlu0 %v1923_v16, %s3362_s24 }
 0x256   : > { %1737 = vrot.lane.b32.xlu1 %v1699_v39, %s3357_s10  ;;  %1735 = vrot.lane.b32.xlu0 %v1697_v43, %s3357_s10 }
 0x25a   : > { %1825 = vrot.lane.b32.xlu1 %v1787_v52, %s3362_s24  ;;  %1823 = vrot.lane.b32.xlu0 %v1785_v55, %s3362_s24 }
 0x25e   : > { %2293 = vrot.lane.b32.xlu0 %v2290_v30, %s3357_s10  ;;  %2295 = vrot.lane.b32.xlu1 %v2292_v5, %s3357_s10 }
 0x262   : > { %2304 = vrot.lane.b32.xlu0 %v2301_v44, %s3362_s24  ;;  %2306 = vrot.lane.b32.xlu1 %v2303_v21, %s3362_s24 }
 0x288   : > { %v1828_v22 = vpop.permute.xlu1 %1827  ;;  %v1740_v50 = vpop.permute.xlu0 %1739 }
 0x289   : > { %v1873_v4 = vsel %vm857_vm7, %v4131_v31, %v1740_v50  ;;  %v2818_v31 = vld [vmem:[%s4537_s5 + $0x30] sm:$0xff] }
 0x28a   : > { %v4312_v6 = vsel %vm1887_vm10, %v1873_v4, %v1828_v22  ;;  %v4333_v58 = vpack.c.bf16 %v2819_v24, %v2818_v31 }
 0x28b   : > { %3077 = vmatprep.mubr.msk.f32.mxu1 %vm1940_vm11, %v4312_v6 }
 0x28c   : > { %v1830_v10 = vpop.permute.xlu1 %1829  ;;  %v1742_v11 = vpop.permute.xlu0 %1741 }
 0x28d   : > { %v1874_v51 = vsel %vm857_vm7, %v4133_v35, %v1742_v11 }
 0x28e   : > { %v4319_v42 = vsel %vm1887_vm10, %v1874_v51, %v1830_v10 }
 0x28f   : > { %3078 = vmatmul.mubr.msk.f32.vlgmr.msra.gmra.mrb[6].mxu1 %vm1940_vm11, %v4319_v42 }
 0x290   : > { %v1746_v1 = vpop.permute.xlu1 %1745  ;;  %v1744_v35 = vpop.permute.xlu0 %1743  ;;  %3186 = vmatpush3.bf16.msra.mxu1 %v4214_v36 }
 0x291   : > { %3105 = vmatprep.subr.mxu1 %v1906_v15  ;;  %v1876_v59 = vsel %vm857_vm7, %v4139_v37, %v1746_v1  ;;  %v1875_v62 = vsel %vm857_vm7, %v4141_v49, %v1744_v35 }
 0x294   : > { %v1834_v63 = vpop.permute.xlu1 %1833  ;;  %v1832_v8 = vpop.permute.xlu0 %1831  ;;  %3106 = vmatpush3.msra.mxu1 %v1906_v15 }
 0x295   : > { %v4340_v9 = vsel %vm1887_vm10, %v1876_v59, %v1834_v63  ;;  %v4343_v17 = vsel %vm1887_vm10, %v1875_v62, %v1832_v8  ;;  %3188 = vmatprep.subr.bf16.mxu1 %v4333_v58 }
 0x296   : > { %3080 = vmatprep.mubr.msk.f32.mxu1 %vm1940_vm11, %v4343_v17 }
 0x297   : > { %3081 = vmatmul.mubr.msk.f32.gmra.mrb[8].mxu1 %vm1940_vm11, %v4340_v9 }
 0x298   : > { %v1750_v37 = vpop.permute.xlu1 %1749  ;;  %v1748_v36 = vpop.permute.xlu0 %1747 }
 0x299   : > { %v1878_v49 = vsel %vm857_vm7, %v4157_v34, %v1750_v37  ;;  %v1877_v18 = vsel %vm857_vm7, %v4159_v20, %v1748_v36  ;;  %v2820_v36 = vld [vmem:[%s4537_s5 + $0x40] sm:$0xff] }
 0x29c   : > { %v1838_v32 = vpop.permute.xlu1 %1837  ;;  %v1836_v25 = vpop.permute.xlu0 %1835 }
 0x29d   : > { %v4355_v33 = vsel %vm1887_vm10, %v1878_v49, %v1838_v32  ;;  %v4358_v16 = vsel %vm1887_vm10, %v1877_v18, %v1836_v25 }
 0x29e   : > { %3083 = vmatprep.mubr.msk.f32.mxu1 %vm1940_vm11, %v4358_v16 }
 0x29f   : > { %3084 = vmatmul.mubr.msk.f32.gmra.mrb[10].mxu1 %vm1940_vm11, %v4355_v33 }
 0x2a0   : > { %v1754_v19 = vpop.permute.xlu1 %1753  ;;  %v1752_v26 = vpop.permute.xlu0 %1751 }
 0x2a1   : > { %v1880_v34 = vsel %vm857_vm7, %v4173_v41, %v1754_v19  ;;  %v1879_v20 = vsel %vm857_vm7, %v4175_v53, %v1752_v26 }
 0x2a4   : > { %v1842_v29 = vpop.permute.xlu1 %1841  ;;  %v1840_v39 = vpop.permute.xlu0 %1839 }
 0x2a5   : > { %v4369_v43 = vsel %vm1887_vm10, %v1880_v34, %v1842_v29  ;;  %v4372_v45 = vsel %vm1887_vm10, %v1879_v20, %v1840_v39 }
 0x2a6   : > { %3086 = vmatprep.mubr.msk.f32.mxu1 %vm1940_vm11, %v4372_v45 }
 0x2a7   : > { %3087 = vmatmul.mubr.msk.f32.gmra.mrb[12].mxu1 %vm1940_vm11, %v4369_v43 }
 0x2a8   : > { %v1758_v46 = vpop.permute.xlu1 %1757  ;;  %v1756_v56 = vpop.permute.xlu0 %1755 }
 0x2a9   : > { %v1882_v41 = vsel %vm857_vm7, %v4198_v13, %v1758_v46  ;;  %v1881_v53 = vsel %vm857_vm7, %v4200_v0, %v1756_v56 }
 0x2ac   : > { %v1846_v28 = vpop.permute.xlu1 %1845  ;;  %v1844_v52 = vpop.permute.xlu0 %1843 }
 0x2ad   : > { %v4383_v55 = vsel %vm1887_vm10, %v1882_v41, %v1846_v28  ;;  %v4386_v57 = vsel %vm1887_vm10, %v1881_v53, %v1844_v52 }
 0x2ae   : > { %3089 = vmatprep.mubr.msk.f32.mxu1 %vm1940_vm11, %v4386_v57 }
 0x2af   : > { %3090 = vmatmul.mubr.msk.f32.gmra.mrb[14].mxu1 %vm1940_vm11, %v4383_v55 }
 0x2b0   : > { %v1762_v60 = vpop.permute.xlu1 %1761  ;;  %v1760_v61 = vpop.permute.xlu0 %1759 }
 0x2b1   : > { %v1884_v13 = vsel %vm857_vm7, %v4223_v47, %v1762_v60  ;;  %v1883_v0 = vsel %vm857_vm7, %v4225_v54, %v1760_v61 }
 0x2b4   : > { %v1850_v30 = vpop.permute.xlu1 %1849  ;;  %v1848_v5 = vpop.permute.xlu0 %1847 }
 0x2b5   : > { %v1901_v2 = vsel %vm1887_vm10, %v1884_v13, %v1850_v30  ;;  %v1900_v38 = vsel %vm1887_vm10, %v1883_v0, %v1848_v5 }
 0x2b6   : > { %3092 = vmatprep.mubr.msk.f32.mxu1 %vm1940_vm11, %v1900_v38 }
 0x2b7   : > { %3093 = vmatmul.mubr.msk.f32.gmra.mrb[16].mxu1 %vm1940_vm11, %v1901_v2 }
 0x2b8   : > { %v1766_v44 = vpop.permute.xlu1 %1765  ;;  %v1764_v21 = vpop.permute.xlu0 %1763 }
 0x2b9   : > { %v1886_v22 = vsel %vm857_vm7, %v4239_v7, %v1766_v44  ;;  %v1885_v47 = vsel %vm857_vm7, %v4241_v27, %v1764_v21 }
 0x2bc   : > { %v1854_v50 = vpop.permute.xlu1 %1853  ;;  %v1852_v54 = vpop.permute.xlu0 %1851 }
 0x2bd   : > { %v1903_v4 = vsel %vm1887_vm10, %v1886_v22, %v1854_v50  ;;  %v1902_v10 = vsel %vm1887_vm10, %v1885_v47, %v1852_v54 }
 0x2be   : > { %3095 = vmatprep.mubr.msk.f32.mxu1 %vm1940_vm11, %v1902_v10 }
 0x2bf   : > { %3096 = vmatmul.mubr.msk.f32.gmra.mrb[18].mxu1 %vm1940_vm11, %v1903_v4 }
 0x2c0   : > { %v1918_v11 = vpop.permute.xlu1 %1917  ;;  %v1916_v51 = vpop.permute.xlu0 %1915 }
 0x2c1   : > { %v1933_v15 = vsel %vm857_vm7, %v4255_v14, %v1918_v11  ;;  %v1932_v7 = vsel %vm857_vm7, %v4257_v23, %v1916_v51 }
 0x2c4   : > { %v1929_v31 = vpop.permute.xlu1 %1928  ;;  %v1927_v27 = vpop.permute.xlu0 %1926 }
 0x2c5   : > { %v1935_v24 = vsel %vm1887_vm10, %v1933_v15, %v1929_v31  ;;  %v1934_v1 = vsel %vm1887_vm10, %v1932_v7, %v1927_v27 }
 0x2c6   : > { %3098 = vmatprep.mubr.msk.f32.mxu1 %vm1940_vm11, %v1934_v1 }
 0x2c7   : > { %3099 = vmatmul.mubr.msk.f32.gmra.mrb[20].mxu1 %vm1940_vm11, %v1935_v24 }
 0x2c8   : > { %v1738_v35 = vpop.permute.xlu1 %1737  ;;  %v1736_v59 = vpop.permute.xlu0 %1735 }
 0x2c9   : > { %v1872_v62 = vsel %vm857_vm7, %v4271_v12, %v1738_v35  ;;  %v1871_v14 = vsel %vm857_vm7, %v4273_v3, %v1736_v59 }
 0x2cc   : > { %v1826_v63 = vpop.permute.xlu1 %1825  ;;  %v1824_v23 = vpop.permute.xlu0 %1823 }
 0x2cd   : > { %v1889_v8 = vsel %vm1887_vm10, %v1872_v62, %v1826_v63  ;;  %v1888_v37 = vsel %vm1887_vm10, %v1871_v14, %v1824_v23 }
 0x2ce   : > { %3107 = vmatprep.mubr.msk.f32.mxu1 %vm1940_vm11, %v1888_v37 }
 0x2cf   : > { %3108 = vmatmul.mubr.msk.f32.vlgmr.msra.gmra.mrb[6].mxu1 %vm1940_vm11, %v1889_v8 }
 0x2d0   : > { %3190 = vmatpush3.bf16.msra.mxu1 %v4333_v58  ;;  %3110 = vmatprep.mubr.msk.f32.mxu1 %vm1940_vm11, %v4312_v6  ;;  %v2294_v12 = vpop.permute.xlu0 %2293  ;;  %v2296_v3 = vpop.permute.xlu1 %2295 }
 0x2d1   : > { %3135 = vmatprep.subr.mxu1 %v2820_v36  ;;  %v2310_v6 = vsel %vm857_vm7, %v4287_v40, %v2294_v12  ;;  %v2837_v40 = vld [vmem:[%s4538_s6] ss:$0 sm:$0xff] }
 0x2d3   : > { %3111 = vmatmul.mubr.msk.f32.gmra.mrb[8].mxu1 %vm1940_vm11, %v4319_v42 }
 0x2d4   : > { %3113 = vmatprep.mubr.msk.f32.mxu1 %vm1940_vm11, %v4343_v17  ;;  %3136 = vmatpush3.msra.mxu1 %v2820_v36  ;;  %v2305_v42 = vpop.permute.xlu0 %2304 }
 0x2d5   : > { %v2312_v58 = vsel %vm1887_vm10, %v2310_v6, %v2305_v42 }
 0x2d7   : > { %3114 = vmatmul.mubr.msk.f32.gmra.mrb[10].mxu1 %vm1940_vm11, %v4340_v9 }
 0x2d8   : > { %3116 = vmatprep.mubr.msk.f32.mxu1 %vm1940_vm11, %v4358_v16 }
 0x2db   : > { %3117 = vmatmul.mubr.msk.f32.gmra.mrb[12].mxu1 %vm1940_vm11, %v4355_v33 }
 0x2dc   : > { %3119 = vmatprep.mubr.msk.f32.mxu1 %vm1940_vm11, %v4372_v45 }
 0x2df   : > { %3120 = vmatmul.mubr.msk.f32.gmra.mrb[14].mxu1 %vm1940_vm11, %v4369_v43 }
 0x2e0   : > { %3122 = vmatprep.mubr.msk.f32.mxu1 %vm1940_vm11, %v4386_v57 }
 0x2e3   : > { %3123 = vmatmul.mubr.msk.f32.gmra.mrb[16].mxu1 %vm1940_vm11, %v4383_v55 }
 0x2e4   : > { %3125 = vmatprep.mubr.msk.f32.mxu1 %vm1940_vm11, %v1900_v38 }
 0x2e7   : > { %3126 = vmatmul.mubr.msk.f32.gmra.mrb[18].mxu1 %vm1940_vm11, %v1901_v2 }
 0x2e8   : > { %3128 = vmatprep.mubr.msk.f32.mxu1 %vm1940_vm11, %v1902_v10 }
 0x2eb   : > { %3129 = vmatmul.mubr.msk.f32.gmra.mrb[20].mxu1 %vm1940_vm11, %v1903_v4 }
 0x2ec   : > { %3137 = vmatprep.mubr.msk.f32.mxu1 %vm1940_vm11, %v4343_v17  ;;  %v2307_v17 = vpop.permute.xlu1 %2306 }
 0x2ef   : > { %3138 = vmatmul.mubr.msk.f32.vlgmr.msra.gmra.mrb[6].mxu1 %vm1940_vm11, %v4340_v9  ;;  %v2311_v9 = vsel %vm857_vm7, %v4289_v48, %v2296_v3 }
 0x2f0   : > { %3140 = vmatprep.mubr.msk.f32.mxu1 %vm1940_vm11, %v4358_v16  ;;  %v2313_v49 = vsel %vm1887_vm10, %v2311_v9, %v2307_v17 }
 0x2f3   : > { %3141 = vmatmul.mubr.msk.f32.gmra.mrb[8].mxu1 %vm1940_vm11, %v4355_v33 }
 0x2f4   : > { %3143 = vmatprep.mubr.msk.f32.mxu1 %vm1940_vm11, %v4372_v45 }
 0x2f7   : > { %3144 = vmatmul.mubr.msk.f32.gmra.mrb[10].mxu1 %vm1940_vm11, %v4369_v43 }
 0x2f8   : > { %3146 = vmatprep.mubr.msk.f32.mxu1 %vm1940_vm11, %v4386_v57 }
 0x2fb   : > { %3147 = vmatmul.mubr.msk.f32.gmra.mrb[12].mxu1 %vm1940_vm11, %v4383_v55 }
 0x2fc   : > { %3149 = vmatprep.mubr.msk.f32.mxu1 %vm1940_vm11, %v1900_v38 }
 0x2ff   : > { %3150 = vmatmul.mubr.msk.f32.gmra.mrb[14].mxu1 %vm1940_vm11, %v1901_v2 }
 0x300   : > { %3152 = vmatprep.mubr.msk.f32.mxu1 %vm1940_vm11, %v1902_v10 }
 0x303   : > { %3153 = vmatmul.mubr.msk.f32.gmra.mrb[16].mxu1 %vm1940_vm11, %v1903_v4 }
 0x304   : > { %3155 = vmatprep.mubr.msk.f32.mxu1 %vm1940_vm11, %v1934_v1 }
 0x307   : > { %3156 = vmatmul.mubr.msk.f32.gmra.mrb[18].mxu1 %vm1940_vm11, %v1935_v24 }
 0x308   : > { %3158 = vmatprep.mubr.msk.f32.mxu1 %vm1940_vm11, %v2312_v58 }
 0x30b   : > { %3159 = vmatmul.mubr.msk.f32.gmra.mrb[20].mxu1 %vm1940_vm11, %v2313_v49 }
 0x3c2   : > { %v3139_v18 = vpop.f32.mrb[6].mxu1 }
 0x3c3   : > { %v2493_v32 = vadd.f32 %v3139_v18, %v2837_v40  ;;  %v2390_v25 = vpop.f32.mrb[7].mxu1 }
 0x3c4   : > { %v2492_v48 = vadd.f32 %v2837_v40, %v2390_v25 }
 0x3c5   : > { %v2509_v33 = vmax.f32 %v2493_v32, 0.0 }
 0x3c6   : > { %v2508_v16 = vmax.f32 %v2492_v48, 0.0  ;;  %v3142_v19 = vpop.f32.mrb[8].mxu1 }
 0x3c7   : > { %2525 = vst.msk [vmem:[%s3506_s21 + $0x8] sm:$0xff] %vm857_vm7, %v2509_v33  ;;  %v2495_v26 = vadd.f32 %v3142_v19, %v2837_v40  ;;  %v2400_v34 = vpop.f32.mrb[9].mxu1 }
 0x3c8   : > { %2524 = vst.msk [vmem:[%s3506_s21] sm:$0xff] %vm857_vm7, %v2508_v16  ;;  %v2494_v20 = vadd.f32 %v2837_v40, %v2400_v34 }
 0x3c9   : > { %v2511_v29 = vmax.f32 %v2495_v26, 0.0 }
 0x3ca   : > { %v2510_v39 = vmax.f32 %v2494_v20, 0.0  ;;  %v3145_v43 = vpop.f32.mrb[10].mxu1 }
 0x3cb   : > { %2527 = vst.msk [vmem:[%s3506_s21 + $0x18] sm:$0xff] %vm857_vm7, %v2511_v29  ;;  %v2497_v45 = vadd.f32 %v3145_v43, %v2837_v40  ;;  %v2410_v46 = vpop.f32.mrb[11].mxu1 }
 0x3cc   : > { %2526 = vst.msk [vmem:[%s3506_s21 + $0x10] sm:$0xff] %vm857_vm7, %v2510_v39  ;;  %v2496_v56 = vadd.f32 %v2837_v40, %v2410_v46 }
 0x3cd   : > { %v2513_v41 = vmax.f32 %v2497_v45, 0.0 }
 0x3ce   : > { %v2512_v53 = vmax.f32 %v2496_v56, 0.0  ;;  %v3148_v28 = vpop.f32.mrb[12].mxu1 }
 0x3cf   : > { %2529 = vst.msk [vmem:[%s3506_s21 + $0x28] sm:$0xff] %vm857_vm7, %v2513_v41  ;;  %v2499_v52 = vadd.f32 %v3148_v28, %v2837_v40  ;;  %v2420_v55 = vpop.f32.mrb[13].mxu1 }
 0x3d0   : > { %2528 = vst.msk [vmem:[%s3506_s21 + $0x20] sm:$0xff] %vm857_vm7, %v2512_v53  ;;  %v2498_v57 = vadd.f32 %v2837_v40, %v2420_v55 }
 0x3d1   : > { %v2515_v60 = vmax.f32 %v2499_v52, 0.0 }
 0x3d2   : > { %v2514_v61 = vmax.f32 %v2498_v57, 0.0  ;;  %v3151_v13 = vpop.f32.mrb[14].mxu1 }
 0x3d3   : > { %2531 = vst.msk [vmem:[%s3506_s21 + $0x38] sm:$0xff] %vm857_vm7, %v2515_v60  ;;  %v2501_v0 = vadd.f32 %v3151_v13, %v2837_v40  ;;  %v2430_v30 = vpop.f32.mrb[15].mxu1 }
 0x3d4   : > { %2530 = vst.msk [vmem:[%s3506_s21 + $0x30] sm:$0xff] %vm857_vm7, %v2514_v61  ;;  %v2500_v5 = vadd.f32 %v2837_v40, %v2430_v30 }
 0x3d5   : > { %v2517_v2 = vmax.f32 %v2501_v0, 0.0 }
 0x3d6   : > { %v2516_v38 = vmax.f32 %v2500_v5, 0.0  ;;  %v3154_v44 = vpop.f32.mrb[16].mxu1 }
 0x3d7   : > { %2533 = vst.msk [vmem:[%s3506_s21 + $0x48] sm:$0xff] %vm857_vm7, %v2517_v2  ;;  %v2503_v21 = vadd.f32 %v3154_v44, %v2837_v40  ;;  %v2440_v22 = vpop.f32.mrb[17].mxu1 }
 0x3d8   : > { %2532 = vst.msk [vmem:[%s3506_s21 + $0x40] sm:$0xff] %vm857_vm7, %v2516_v38  ;;  %v2502_v47 = vadd.f32 %v2837_v40, %v2440_v22 }
 0x3d9   : > { %v2519_v50 = vmax.f32 %v2503_v21, 0.0 }
 0x3da   : > { %v2518_v54 = vmax.f32 %v2502_v47, 0.0  ;;  %v3157_v4 = vpop.f32.mrb[18].mxu1 }
 0x3db   : > { %2535 = vst.msk [vmem:[%s3506_s21 + $0x58] sm:$0xff] %vm857_vm7, %v2519_v50  ;;  %v2505_v10 = vadd.f32 %v3157_v4, %v2837_v40  ;;  %v2450_v11 = vpop.f32.mrb[19].mxu1 }
 0x3dc   : > { %2534 = vst.msk [vmem:[%s3506_s21 + $0x50] sm:$0xff] %vm857_vm7, %v2518_v54  ;;  %v2504_v51 = vadd.f32 %v2837_v40, %v2450_v11 }
 0x3dd   : > { %v2521_v15 = vmax.f32 %v2505_v10, 0.0 }
 0x3de   : > { %v2520_v7 = vmax.f32 %v2504_v51, 0.0  ;;  %v3160_v31 = vpop.f32.mrb[20].mxu1 }
 0x3df   : > { %2537 = vst.msk [vmem:[%s3506_s21 + $0x68] sm:$0xff] %vm857_vm7, %v2521_v15  ;;  %v2507_v27 = vadd.f32 %v3160_v31, %v2837_v40  ;;  %v2460_v24 = vpop.f32.mrb[21].mxu1 }
 0x3e0   : > { %2536 = vst.msk [vmem:[%s3506_s21 + $0x60] sm:$0xff] %vm857_vm7, %v2520_v7  ;;  %v2506_v1 = vadd.f32 %v2837_v40, %v2460_v24 }
 0x3e1   : > { %v2523_v35 = vmax.f32 %v2507_v27, 0.0 }
 0x3e2   : > { %v2522_v59 = vmax.f32 %v2506_v1, 0.0 }
 0x3e3   : > { %2539 = vst.msk [vmem:[%s3506_s21 + $0x78] sm:$0xff] %vm857_vm7, %v2523_v35 }
 0x3e4   : > { %2538 = vst.msk [vmem:[%s3506_s21 + $0x70] sm:$0xff] %vm857_vm7, %v2522_v59 }
 0x3e5 PF: > { %s17_s28 = sadd.s32 1, %s3352_s28   ;;  %s4543_s24 = smov %s3344_s26 }
 0x3e6   : > { %p14_p13 = scmp.ge.s32.totalorder %s17_s28, 6   ;;  %s4544_s25 = smov %s3348_s27 }
 0x3e7   : > { %s4545_s26 = smov %s4548_s29  ;;  %s4546_s27 = smov %s4552_s30 }
 0x3e8   :  { %16 = sbr.rel (!%p14_p13) target bundleno = 3 (0x3), region = 107 }

</bundles_post_ra>
